<compile_context>
chip_gen: v7x
topology: tpu7x:2x2x1
jax: 0.10.0
libtpu: 0.0.40
codegen_flags: <defaults>
</compile_context>

<pallas_src>
import jax
import jax.numpy as jnp
from jax.experimental import pallas as pl
from jax.experimental.pallas import tpu as pltpu
from jax.scipy.linalg import block_diag

# ------------------------- configuration (small shapes) -----------------------
CFG = dict(
    b=2, g=4, k=16,          # batch, groups, points per group
    in_channel=6,            # d: per-point input feature dim
    channels=24,             # transformer width (divisible by heads)
    heads=4, head_dim=8,
    ffn_ratio=1.0,
    xyz_channel=10, xyz_expand=4,
)
BN_EPS = 1e-5

KP_ORDER = ('w_fc', 'w_pe1', 'w_pe2', 'wq', 'wk', 'wv', 'wo', 'w_f1', 'w_f2',
            'bias')


# ------------------------------ parameter setup --------------------------------
def init_params(key, cfg):
    C = cfg['channels']; d = cfg['in_channel']
    H = cfg['heads']; hd = cfg['head_dim']
    Ch = int(C * cfg['ffn_ratio'])
    gc = C // H
    xyz = cfg['xyz_channel']; xe = cfg['xyz_channel'] * cfg['xyz_expand']

    keys = iter(jax.random.split(key, 64))

    def w(*shape, s=0.2):
        return s * jax.random.normal(next(keys), shape, jnp.float32)

    def bn(n):
        gamma = 1.0 + 0.1 * jax.random.normal(next(keys), (n,), jnp.float32)
        beta = 0.1 * jax.random.normal(next(keys), (n,), jnp.float32)
        mean = 0.1 * jax.random.normal(next(keys), (n,), jnp.float32)
        var = jax.random.uniform(next(keys), (n,), jnp.float32, 0.5, 1.5)
        return (gamma, beta, mean, var)

    return dict(
        # fc: Conv1d(d->C, 1) + BN
        fc_w=w(C, d), fc_b=w(C, s=0.1), fc_bn=bn(C),
        # position embedding: Linear(10->40), Linear(40->C)
        pe_w1=w(xe, xyz), pe_b1=w(xe, s=0.1),
        pe_w2=w(C, xe), pe_b2=w(C, s=0.1),
        # attention: grouped conv weights stored per head [H, out_per_g, in_per_g]
        q_w=w(H, hd, gc), k_w=w(H, hd, gc), v_w=w(H, hd, gc),
        o_w=w(H, gc, hd), o_b=w(C, s=0.1), out_bn=bn(C),
        # ffn
        f1_w=w(Ch, C), f1_b=w(Ch, s=0.1), f1_bn=bn(Ch),
        f2_w=w(C, Ch), f2_b=w(C, s=0.1), f2_bn=bn(C),
    )


def to_kernel_params(P, cfg):
    """Transpose / block-diagonalize / fold BN scale into weights, pack biases."""
    H = cfg['heads']; C = cfg['channels']
    Ch = int(C * cfg['ffn_ratio'])
    xe = cfg['xyz_channel'] * cfg['xyz_expand']

    def fold(bn_params, bias):
        gamma, beta, mean, var = bn_params
        s = gamma / jnp.sqrt(var + BN_EPS)
        t = beta - mean * s + s * bias
        return s, t

    fc_s, fc_t = fold(P['fc_bn'], P['fc_b'])
    out_s, out_t = fold(P['out_bn'], P['o_b'])
    f1_s, f1_t = fold(P['f1_bn'], P['f1_b'])
    f2_s, f2_t = fold(P['f2_bn'], P['f2_b'])

    # BN scales folded column-wise into the preceding weight matrices.
    w_fc = P['fc_w'].T * fc_s[None, :]                                  # [d, C]
    wo = block_diag(*[P['o_w'][h].T for h in range(H)]) * out_s[None, :]  # [H*hd, C]
    w_f1 = P['f1_w'].T * f1_s[None, :]                                  # [C, Ch]
    w_f2 = P['f2_w'].T * f2_s[None, :]                                  # [Ch, C]

    # Remaining additive per-channel vectors packed into one (8,128) table.
    bias = jnp.zeros((8, 128), jnp.float32)
    bias = bias.at[0, :C].set(fc_t)
    bias = bias.at[1, :xe].set(P['pe_b1'])
    bias = bias.at[2, :C].set(P['pe_b2'])
    bias = bias.at[3, :C].set(out_t)
    bias = bias.at[4, :Ch].set(f1_t)
    bias = bias.at[5, :C].set(f2_t)

    return dict(
        w_fc=w_fc,
        w_pe1=P['pe_w1'].T, w_pe2=P['pe_w2'].T,
        wq=block_diag(*[P['q_w'][h].T for h in range(H)]),   # [C, H*hd]
        wk=block_diag(*[P['k_w'][h].T for h in range(H)]),
        wv=block_diag(*[P['v_w'][h].T for h in range(H)]),
        wo=wo, w_f1=w_f1, w_f2=w_f2, bias=bias,
    )


# ------------------------------- Pallas kernel ---------------------------------
def pre_extraction_pallas(x, aug, KP, cfg):
    b, g, k, d = x.shape
    C = cfg['channels']; H = cfg['heads']; hd = cfg['head_dim']
    Ch = int(C * cfg['ffn_ratio'])
    xe = cfg['xyz_channel'] * cfg['xyz_expand']
    xyz = aug.shape[-1]
    BG = b * g
    # 2 parallel grid steps so v7x can use both TensorCores; v5e/v6e just run
    # two sublane-dense steps (vs. 8 tiny ones before).
    GSTEPS = 2 if (BG % 2 == 0 and BG >= 2) else 1
    GP = BG // GSTEPS                 # groups per step
    ROWS = GP * k                     # rows per tile (sublane-dense)
    scale = float(hd) ** -0.5
    f32 = jnp.float32

    # glue reshapes only: all (b, g) groups stacked along the row axis
    x_r = x.reshape(BG * k, d).astype(f32)        # [BG*k, d]
    aug_r = aug.reshape(BG * k, xyz).astype(f32)  # [BG*k, xyz]

    def kernel(x_ref, aug_ref,
               w_fc, w_pe1, w_pe2, wq, wk, wv, wo, w_f1, w_f2, bias_ref,
               o_ref):
        xt = x_ref[...]                  # [ROWS, d]
        aug_t = aug_ref[...]             # [ROWS, xyz]

        # unpack additive terms (BN scales already folded into weights)
        B = bias_ref[...]                # [8, 128]
        fc_t = B[0:1, 0:C]
        b_pe1 = B[1:2, 0:xe]
        b_pe2 = B[2:3, 0:C]
        out_t = B[3:4, 0:C]
        f1_t = B[4:5, 0:Ch]
        f2_t = B[5:6, 0:C]

        # fc: Conv1d(d->C, 1) + BatchNorm1d (folded) + ReLU
        y = jnp.dot(xt, w_fc[...], preferred_element_type=f32)
        y = jnp.maximum(y + fc_t, 0.0)                               # [ROWS, C]

        # position embedding: Linear -> ReLU -> Linear
        pe = jnp.dot(aug_t, w_pe1[...], preferred_element_type=f32) + b_pe1
        pe = jnp.maximum(pe, 0.0)
        pe = jnp.dot(pe, w_pe2[...], preferred_element_type=f32) + b_pe2

        # ---------------- TransformerBlock ----------------
        x_in = y + pe                                                # [ROWS, C]
        q = jnp.dot(x_in, wq[...], preferred_element_type=f32)      # [ROWS, H*hd]
        kk = jnp.dot(x_in, wk[...], preferred_element_type=f32)
        v = jnp.dot(x_in, wv[...], preferred_element_type=f32)

        # group-batched attention: batch axis = GP groups in this tile
        q3 = q.reshape(GP, k, H * hd)
        k3 = kk.reshape(GP, k, H * hd)
        v3 = v.reshape(GP, k, H * hd)

        head_outs = []
        for h in range(H):                                           # static unroll
            sl = slice(h * hd, (h + 1) * hd)
            qh, kh, vh = q3[:, :, sl], k3[:, :, sl], v3[:, :, sl]    # [GP, k, hd]
            smi = jnp.einsum('bnd,bmd->bnm', qh, kh,
                             preferred_element_type=f32) * scale    # [GP, k, k]
            smi = smi - jnp.max(smi, axis=-1, keepdims=True)
            p = jnp.exp(smi)
            p = p * pl.reciprocal(jnp.sum(p, axis=-1, keepdims=True), approx=True)
            head_outs.append(jnp.einsum('bnm,bmd->bnd', p, vh,
                                        preferred_element_type=f32))
        att = jnp.concatenate(head_outs, axis=-1)                    # [GP, k, H*hd]
        att = att.reshape(ROWS, H * hd)

        # to_out (grouped conv as block-diag matmul, BN scale folded) + residual
        att = jnp.dot(att, wo[...], preferred_element_type=f32) + out_t
        att = jnp.maximum(att + y, 0.0)                              # [ROWS, C]

        # FFN: (Conv1d + BN + ReLU) x 2, then residual + ReLU
        h1 = jnp.dot(att, w_f1[...], preferred_element_type=f32)
        h1 = jnp.maximum(h1 + f1_t, 0.0)
        h2 = jnp.dot(h1, w_f2[...], preferred_element_type=f32)
        h2 = jnp.maximum(h2 + f2_t, 0.0)
        out = jnp.maximum(att + h2, 0.0)                             # [ROWS, C]

        # adaptive_max_pool1d over the point axis of each group; one batched
        # [GP, C] store per step (lane-batched, not 8 tiny (1, C) stores).
        o_ref[...] = jnp.max(out.reshape(GP, k, C), axis=1)          # [GP, C]

    weights = [KP[name] for name in KP_ORDER]
    in_specs = [
        pl.BlockSpec((ROWS, d), lambda i: (i, 0)),
        pl.BlockSpec((ROWS, xyz), lambda i: (i, 0)),
    ] + [pl.BlockSpec(wt.shape, (lambda i, n=wt.ndim: (0,) * n)) for wt in weights]

    out = pl.pallas_call(
        kernel,
        out_shape=jax.ShapeDtypeStruct((GSTEPS, GP, C), f32),
        grid=(GSTEPS,),
        in_specs=in_specs,
        out_specs=pl.BlockSpec((None, GP, C), lambda i: (i, 0, 0)),
        compiler_params=pltpu.CompilerParams(
            dimension_semantics=("parallel",)),
    )(x_r, aug_r, *weights)

    # [GSTEPS, GP, C] -> [b, g, C] -> [b, C, g]  (matches PyTorch output layout)
    return jnp.transpose(out.reshape(b, g, C), (0, 2, 1))


# ------------------------------ pure-JAX reference ------------------------------
def bn_eval(z, gamma, beta, mean, var):
    inv = gamma / jnp.sqrt(var + BN_EPS)
    return (z - mean[:, None]) * inv[:, None] + beta[:, None]


def reference_forward(x, aug, P, cfg):
    """Mirrors the PyTorch forward (NCW layout, BatchNorm in eval mode)."""
    hp = jax.lax.Precision.HIGHEST
    b, g, k, d = x.shape
    C = cfg['channels']; H = cfg['heads']; hd = cfg['head_dim']
    gc = C // H
    BG = b * g
    scale = float(hd) ** -0.5

    xr = jnp.transpose(x, (0, 1, 3, 2)).reshape(BG, d, k)            # [BG, d, k]
    y = jnp.einsum('od,bdk->bok', P['fc_w'], xr, precision=hp) + P['fc_b'][:, None]
    y = jax.nn.relu(bn_eval(y, *P['fc_bn']))

    pe = jax.nn.relu(jnp.einsum('bgki,oi->bgko', aug, P['pe_w1'], precision=hp)
                     + P['pe_b1'])
    pe = jnp.einsum('bgki,oi->bgko', pe, P['pe_w2'], precision=hp) + P['pe_b2']
    pe = jnp.transpose(pe.reshape(BG, k, C), (0, 2, 1))              # (b g) d k

    xin = y + pe
    xg = xin.reshape(BG, H, gc, k)
    q = jnp.einsum('hoi,bhik->bhok', P['q_w'], xg, precision=hp)
    kk = jnp.einsum('hoi,bhik->bhok', P['k_w'], xg, precision=hp)
    v = jnp.einsum('hoi,bhik->bhok', P['v_w'], xg, precision=hp)
    q, kk, v = (jnp.transpose(t, (0, 1, 3, 2)) for t in (q, kk, v))  # b h n d
    smi = jnp.einsum('bhid,bhjd->bhij', q, kk, precision=hp) * scale
    attn = jax.nn.softmax(smi, axis=-1)
    o = jnp.einsum('bhij,bhjd->bhid', attn, v, precision=hp)
    og = jnp.transpose(o, (0, 1, 3, 2))                              # b h d n
    att = jnp.einsum('hoi,bhik->bhok', P['o_w'], og, precision=hp)
    att = att.reshape(BG, C, k) + P['o_b'][:, None]
    att = bn_eval(att, *P['out_bn'])
    att = jax.nn.relu(att + y)

    h1 = jnp.einsum('oi,bik->bok', P['f1_w'], att, precision=hp) + P['f1_b'][:, None]
    h1 = jax.nn.relu(bn_eval(h1, *P['f1_bn']))
    h2 = jnp.einsum('oi,bik->bok', P['f2_w'], h1, precision=hp) + P['f2_b'][:, None]
    h2 = jax.nn.relu(bn_eval(h2, *P['f2_bn']))
    out = jax.nn.relu(att + h2)

    pooled = jnp.max(out, axis=-1)                                   # [BG, C]
    return jnp.transpose(pooled.reshape(b, g, C), (0, 2, 1))         # [b, C, g]


# ------------------------------------ main --------------------------------------
if __name__ == "__main__":
    cfg = CFG
    key = jax.random.PRNGKey(0)
    kx, ka, kp = jax.random.split(key, 3)
    b, g, k = cfg['b'], cfg['g'], cfg['k']

    x = jax.random.normal(kx, (b, g, k, cfg['in_channel']), jnp.float32)
    aug = jax.random.normal(ka, (b, g, k, cfg['xyz_channel']), jnp.float32)

    P = init_params(kp, cfg)
    KP = to_kernel_params(P, cfg)

    out = pre_extraction_pallas(x, aug, KP, cfg)
    out = jax.block_until_ready(out)
    assert out.shape == (b, cfg['channels'], g), out.shape

    ref = reference_forward(x, aug, P, cfg)
    max_err = float(jnp.max(jnp.abs(out - ref)))
    if not bool(jnp.allclose(out, ref, atol=1e-2, rtol=1e-2)):
        raise AssertionError(f"kernel/reference mismatch, max_abs_err={max_err}")
    print("KERNEL_OK")
</pallas_src>

<mosaic_0001>
module attributes {stable_mosaic.version = 11 : i64} {
  func.func @kernel(%arg0: i32, %arg1: memref<64x6xf32, #tpu.memory_space<vmem>>, %arg2: memref<64x10xf32, #tpu.memory_space<vmem>>, %arg3: memref<6x24xf32, #tpu.memory_space<vmem>>, %arg4: memref<10x40xf32, #tpu.memory_space<vmem>>, %arg5: memref<40x24xf32, #tpu.memory_space<vmem>>, %arg6: memref<24x32xf32, #tpu.memory_space<vmem>>, %arg7: memref<24x32xf32, #tpu.memory_space<vmem>>, %arg8: memref<24x32xf32, #tpu.memory_space<vmem>>, %arg9: memref<32x24xf32, #tpu.memory_space<vmem>>, %arg10: memref<24x24xf32, #tpu.memory_space<vmem>>, %arg11: memref<24x24xf32, #tpu.memory_space<vmem>>, %arg12: memref<8x128xf32, #tpu.memory_space<vmem>>, %arg13: memref<1x4x24xf32, #tpu.memory_space<vmem>>) attributes {dimension_semantics = [#tpu.dimension_semantics<parallel>], iteration_bounds = array<i64: 2>, scalar_prefetch = 0 : i64, scratch_operands = 0 : i64, tpu.core_type = #tpu.core_type<tc>, window_params = [{transform_indices = @transform_0, window_bounds = array<i64: 64, 6>}, {transform_indices = @transform_1, window_bounds = array<i64: 64, 10>}, {pipeline_mode = #tpu.pipeline_mode<synchronous>, transform_indices = @transform_2, window_bounds = array<i64: 6, 24>}, {pipeline_mode = #tpu.pipeline_mode<synchronous>, transform_indices = @transform_3, window_bounds = array<i64: 10, 40>}, {pipeline_mode = #tpu.pipeline_mode<synchronous>, transform_indices = @transform_4, window_bounds = array<i64: 40, 24>}, {pipeline_mode = #tpu.pipeline_mode<synchronous>, transform_indices = @transform_5, window_bounds = array<i64: 24, 32>}, {pipeline_mode = #tpu.pipeline_mode<synchronous>, transform_indices = @transform_6, window_bounds = array<i64: 24, 32>}, {pipeline_mode = #tpu.pipeline_mode<synchronous>, transform_indices = @transform_7, window_bounds = array<i64: 24, 32>}, {pipeline_mode = #tpu.pipeline_mode<synchronous>, transform_indices = @transform_8, window_bounds = array<i64: 32, 24>}, {pipeline_mode = #tpu.pipeline_mode<synchronous>, transform_indices = @transform_9, window_bounds = array<i64: 24, 24>}, {pipeline_mode = #tpu.pipeline_mode<synchronous>, transform_indices = @transform_10, window_bounds = array<i64: 24, 24>}, {pipeline_mode = #tpu.pipeline_mode<synchronous>, transform_indices = @transform_11, window_bounds = array<i64: 8, 128>}, {transform_indices = @transform_12, window_bounds = array<i64: 1, 4, 24>}]} {
    %c0 = arith.constant 0 : index
    %c0_0 = arith.constant 0 : index
    %0 = vector.load %arg1[%c0, %c0_0] : memref<64x6xf32, #tpu.memory_space<vmem>>, vector<64x6xf32>
    %c0_1 = arith.constant 0 : index
    %c0_2 = arith.constant 0 : index
    %1 = vector.load %arg2[%c0_1, %c0_2] : memref<64x10xf32, #tpu.memory_space<vmem>>, vector<64x10xf32>
    %c0_3 = arith.constant 0 : index
    %c0_4 = arith.constant 0 : index
    %2 = vector.load %arg12[%c0_3, %c0_4] : memref<8x128xf32, #tpu.memory_space<vmem>>, vector<8x128xf32>
    %3 = vector.extract_strided_slice %2 {offsets = [0, 0], sizes = [1, 24], strides = [1, 1]} : vector<8x128xf32> to vector<1x24xf32>
    %4 = vector.extract_strided_slice %2 {offsets = [1, 0], sizes = [1, 40], strides = [1, 1]} : vector<8x128xf32> to vector<1x40xf32>
    %5 = vector.extract_strided_slice %2 {offsets = [2, 0], sizes = [1, 24], strides = [1, 1]} : vector<8x128xf32> to vector<1x24xf32>
    %6 = vector.extract_strided_slice %2 {offsets = [3, 0], sizes = [1, 24], strides = [1, 1]} : vector<8x128xf32> to vector<1x24xf32>
    %7 = vector.extract_strided_slice %2 {offsets = [4, 0], sizes = [1, 24], strides = [1, 1]} : vector<8x128xf32> to vector<1x24xf32>
    %8 = vector.extract_strided_slice %2 {offsets = [5, 0], sizes = [1, 24], strides = [1, 1]} : vector<8x128xf32> to vector<1x24xf32>
    %c0_5 = arith.constant 0 : index
    %c0_6 = arith.constant 0 : index
    %9 = vector.load %arg3[%c0_5, %c0_6] : memref<6x24xf32, #tpu.memory_space<vmem>>, vector<6x24xf32>
    %cst = arith.constant dense<0.000000e+00> : vector<64x24xf32>
    %10 = tpu.matmul %0, %9, %cst {dimension_numbers = #tpu.dot_dimension_numbers<[1], [0], [0], [1], [0, 0, 1, 1], [], []>} : vector<64x6xf32>, vector<6x24xf32>, vector<64x24xf32> -> vector<64x24xf32>
    %11 = vector.broadcast %3 : vector<1x24xf32> to vector<64x24xf32>
    %12 = arith.addf %10, %11 : vector<64x24xf32>
    %cst_7 = arith.constant 0.000000e+00 : f32
    %13 = vector.broadcast %cst_7 : f32 to vector<64x24xf32>
    %14 = arith.maximumf %12, %13 : vector<64x24xf32>
    %c0_8 = arith.constant 0 : index
    %c0_9 = arith.constant 0 : index
    %15 = vector.load %arg4[%c0_8, %c0_9] : memref<10x40xf32, #tpu.memory_space<vmem>>, vector<10x40xf32>
    %cst_10 = arith.constant dense<0.000000e+00> : vector<64x40xf32>
    %16 = tpu.matmul %1, %15, %cst_10 {dimension_numbers = #tpu.dot_dimension_numbers<[1], [0], [0], [1], [0, 0, 1, 1], [], []>} : vector<64x10xf32>, vector<10x40xf32>, vector<64x40xf32> -> vector<64x40xf32>
    %17 = vector.broadcast %4 : vector<1x40xf32> to vector<64x40xf32>
    %18 = arith.addf %16, %17 : vector<64x40xf32>
    %cst_11 = arith.constant 0.000000e+00 : f32
    %19 = vector.broadcast %cst_11 : f32 to vector<64x40xf32>
    %20 = arith.maximumf %18, %19 : vector<64x40xf32>
    %c0_12 = arith.constant 0 : index
    %c0_13 = arith.constant 0 : index
    %21 = vector.load %arg5[%c0_12, %c0_13] : memref<40x24xf32, #tpu.memory_space<vmem>>, vector<40x24xf32>
    %cst_14 = arith.constant dense<0.000000e+00> : vector<64x24xf32>
    %22 = tpu.matmul %20, %21, %cst_14 {dimension_numbers = #tpu.dot_dimension_numbers<[1], [0], [0], [1], [0, 0, 1, 1], [], []>} : vector<64x40xf32>, vector<40x24xf32>, vector<64x24xf32> -> vector<64x24xf32>
    %23 = vector.broadcast %5 : vector<1x24xf32> to vector<64x24xf32>
    %24 = arith.addf %22, %23 : vector<64x24xf32>
    %25 = arith.addf %14, %24 : vector<64x24xf32>
    %c0_15 = arith.constant 0 : index
    %c0_16 = arith.constant 0 : index
    %26 = vector.load %arg6[%c0_15, %c0_16] : memref<24x32xf32, #tpu.memory_space<vmem>>, vector<24x32xf32>
    %cst_17 = arith.constant dense<0.000000e+00> : vector<64x32xf32>
    %27 = tpu.matmul %25, %26, %cst_17 {dimension_numbers = #tpu.dot_dimension_numbers<[1], [0], [0], [1], [0, 0, 1, 1], [], []>} : vector<64x24xf32>, vector<24x32xf32>, vector<64x32xf32> -> vector<64x32xf32>
    %c0_18 = arith.constant 0 : index
    %c0_19 = arith.constant 0 : index
    %28 = vector.load %arg7[%c0_18, %c0_19] : memref<24x32xf32, #tpu.memory_space<vmem>>, vector<24x32xf32>
    %cst_20 = arith.constant dense<0.000000e+00> : vector<64x32xf32>
    %29 = tpu.matmul %25, %28, %cst_20 {dimension_numbers = #tpu.dot_dimension_numbers<[1], [0], [0], [1], [0, 0, 1, 1], [], []>} : vector<64x24xf32>, vector<24x32xf32>, vector<64x32xf32> -> vector<64x32xf32>
    %c0_21 = arith.constant 0 : index
    %c0_22 = arith.constant 0 : index
    %30 = vector.load %arg8[%c0_21, %c0_22] : memref<24x32xf32, #tpu.memory_space<vmem>>, vector<24x32xf32>
    %cst_23 = arith.constant dense<0.000000e+00> : vector<64x32xf32>
    %31 = tpu.matmul %25, %30, %cst_23 {dimension_numbers = #tpu.dot_dimension_numbers<[1], [0], [0], [1], [0, 0, 1, 1], [], []>} : vector<64x24xf32>, vector<24x32xf32>, vector<64x32xf32> -> vector<64x32xf32>
    %32 = vector.shape_cast %27 : vector<64x32xf32> to vector<4x16x32xf32>
    %33 = vector.shape_cast %29 : vector<64x32xf32> to vector<4x16x32xf32>
    %34 = vector.shape_cast %31 : vector<64x32xf32> to vector<4x16x32xf32>
    %35 = vector.extract_strided_slice %32 {offsets = [0, 0, 0], sizes = [4, 16, 8], strides = [1, 1, 1]} : vector<4x16x32xf32> to vector<4x16x8xf32>
    %36 = vector.extract_strided_slice %33 {offsets = [0, 0, 0], sizes = [4, 16, 8], strides = [1, 1, 1]} : vector<4x16x32xf32> to vector<4x16x8xf32>
    %37 = vector.extract_strided_slice %34 {offsets = [0, 0, 0], sizes = [4, 16, 8], strides = [1, 1, 1]} : vector<4x16x32xf32> to vector<4x16x8xf32>
    "tpu.trace_start"() <{level = 10 : i32, message = "bnd,bmd->bnm"}> : () -> ()
    %cst_24 = arith.constant dense<0.000000e+00> : vector<4x16x16xf32>
    %38 = tpu.matmul %35, %36, %cst_24 {dimension_numbers = #tpu.dot_dimension_numbers<[2], [2], [1], [1], [0, 0, 0, 1, 1, 1], [0], [0]>} : vector<4x16x8xf32>, vector<4x16x8xf32>, vector<4x16x16xf32> -> vector<4x16x16xf32>
    "tpu.trace_stop"() : () -> ()
    %cst_25 = arith.constant 0.353553385 : f32
    %39 = vector.broadcast %cst_25 : f32 to vector<4x16x16xf32>
    %40 = arith.mulf %38, %39 : vector<4x16x16xf32>
    %cst_26 = arith.constant dense<0xFF800000> : vector<4x16xf32>
    %41 = vector.multi_reduction <maximumf>, %40, %cst_26 [2] : vector<4x16x16xf32> to vector<4x16xf32>
    %42 = vector.shape_cast %41 : vector<4x16xf32> to vector<4x16x1xf32>
    %43 = vector.broadcast %42 : vector<4x16x1xf32> to vector<4x16x16xf32>
    %44 = arith.subf %40, %43 : vector<4x16x16xf32>
    %45 = math.exp %44 : vector<4x16x16xf32>
    %cst_27 = arith.constant dense<0.000000e+00> : vector<4x16xf32>
    %46 = vector.multi_reduction <add>, %45, %cst_27 [2] : vector<4x16x16xf32> to vector<4x16xf32>
    %47 = vector.shape_cast %46 : vector<4x16xf32> to vector<4x16x1xf32>
    %48 = tpu.reciprocal %47 {approx = true} : vector<4x16x1xf32> -> vector<4x16x1xf32>
    %49 = vector.broadcast %48 : vector<4x16x1xf32> to vector<4x16x16xf32>
    %50 = arith.mulf %45, %49 : vector<4x16x16xf32>
    "tpu.trace_start"() <{level = 10 : i32, message = "bnm,bmd->bnd"}> : () -> ()
    %cst_28 = arith.constant dense<0.000000e+00> : vector<4x16x8xf32>
    %51 = tpu.matmul %50, %37, %cst_28 {dimension_numbers = #tpu.dot_dimension_numbers<[2], [1], [1], [2], [0, 0, 0, 1, 1, 2], [0], [0]>} : vector<4x16x16xf32>, vector<4x16x8xf32>, vector<4x16x8xf32> -> vector<4x16x8xf32>
    "tpu.trace_stop"() : () -> ()
    %52 = vector.extract_strided_slice %32 {offsets = [0, 0, 8], sizes = [4, 16, 8], strides = [1, 1, 1]} : vector<4x16x32xf32> to vector<4x16x8xf32>
    %53 = vector.extract_strided_slice %33 {offsets = [0, 0, 8], sizes = [4, 16, 8], strides = [1, 1, 1]} : vector<4x16x32xf32> to vector<4x16x8xf32>
    %54 = vector.extract_strided_slice %34 {offsets = [0, 0, 8], sizes = [4, 16, 8], strides = [1, 1, 1]} : vector<4x16x32xf32> to vector<4x16x8xf32>
    "tpu.trace_start"() <{level = 10 : i32, message = "bnd,bmd->bnm"}> : () -> ()
    %cst_29 = arith.constant dense<0.000000e+00> : vector<4x16x16xf32>
    %55 = tpu.matmul %52, %53, %cst_29 {dimension_numbers = #tpu.dot_dimension_numbers<[2], [2], [1], [1], [0, 0, 0, 1, 1, 1], [0], [0]>} : vector<4x16x8xf32>, vector<4x16x8xf32>, vector<4x16x16xf32> -> vector<4x16x16xf32>
    "tpu.trace_stop"() : () -> ()
    %cst_30 = arith.constant 0.353553385 : f32
    %56 = vector.broadcast %cst_30 : f32 to vector<4x16x16xf32>
    %57 = arith.mulf %55, %56 : vector<4x16x16xf32>
    %cst_31 = arith.constant dense<0xFF800000> : vector<4x16xf32>
    %58 = vector.multi_reduction <maximumf>, %57, %cst_31 [2] : vector<4x16x16xf32> to vector<4x16xf32>
    %59 = vector.shape_cast %58 : vector<4x16xf32> to vector<4x16x1xf32>
    %60 = vector.broadcast %59 : vector<4x16x1xf32> to vector<4x16x16xf32>
    %61 = arith.subf %57, %60 : vector<4x16x16xf32>
    %62 = math.exp %61 : vector<4x16x16xf32>
    %cst_32 = arith.constant dense<0.000000e+00> : vector<4x16xf32>
    %63 = vector.multi_reduction <add>, %62, %cst_32 [2] : vector<4x16x16xf32> to vector<4x16xf32>
    %64 = vector.shape_cast %63 : vector<4x16xf32> to vector<4x16x1xf32>
    %65 = tpu.reciprocal %64 {approx = true} : vector<4x16x1xf32> -> vector<4x16x1xf32>
    %66 = vector.broadcast %65 : vector<4x16x1xf32> to vector<4x16x16xf32>
    %67 = arith.mulf %62, %66 : vector<4x16x16xf32>
    "tpu.trace_start"() <{level = 10 : i32, message = "bnm,bmd->bnd"}> : () -> ()
    %cst_33 = arith.constant dense<0.000000e+00> : vector<4x16x8xf32>
    %68 = tpu.matmul %67, %54, %cst_33 {dimension_numbers = #tpu.dot_dimension_numbers<[2], [1], [1], [2], [0, 0, 0, 1, 1, 2], [0], [0]>} : vector<4x16x16xf32>, vector<4x16x8xf32>, vector<4x16x8xf32> -> vector<4x16x8xf32>
    "tpu.trace_stop"() : () -> ()
    %69 = vector.extract_strided_slice %32 {offsets = [0, 0, 16], sizes = [4, 16, 8], strides = [1, 1, 1]} : vector<4x16x32xf32> to vector<4x16x8xf32>
    %70 = vector.extract_strided_slice %33 {offsets = [0, 0, 16], sizes = [4, 16, 8], strides = [1, 1, 1]} : vector<4x16x32xf32> to vector<4x16x8xf32>
    %71 = vector.extract_strided_slice %34 {offsets = [0, 0, 16], sizes = [4, 16, 8], strides = [1, 1, 1]} : vector<4x16x32xf32> to vector<4x16x8xf32>
    "tpu.trace_start"() <{level = 10 : i32, message = "bnd,bmd->bnm"}> : () -> ()
    %cst_34 = arith.constant dense<0.000000e+00> : vector<4x16x16xf32>
    %72 = tpu.matmul %69, %70, %cst_34 {dimension_numbers = #tpu.dot_dimension_numbers<[2], [2], [1], [1], [0, 0, 0, 1, 1, 1], [0], [0]>} : vector<4x16x8xf32>, vector<4x16x8xf32>, vector<4x16x16xf32> -> vector<4x16x16xf32>
    "tpu.trace_stop"() : () -> ()
    %cst_35 = arith.constant 0.353553385 : f32
    %73 = vector.broadcast %cst_35 : f32 to vector<4x16x16xf32>
    %74 = arith.mulf %72, %73 : vector<4x16x16xf32>
    %cst_36 = arith.constant dense<0xFF800000> : vector<4x16xf32>
    %75 = vector.multi_reduction <maximumf>, %74, %cst_36 [2] : vector<4x16x16xf32> to vector<4x16xf32>
    %76 = vector.shape_cast %75 : vector<4x16xf32> to vector<4x16x1xf32>
    %77 = vector.broadcast %76 : vector<4x16x1xf32> to vector<4x16x16xf32>
    %78 = arith.subf %74, %77 : vector<4x16x16xf32>
    %79 = math.exp %78 : vector<4x16x16xf32>
    %cst_37 = arith.constant dense<0.000000e+00> : vector<4x16xf32>
    %80 = vector.multi_reduction <add>, %79, %cst_37 [2] : vector<4x16x16xf32> to vector<4x16xf32>
    %81 = vector.shape_cast %80 : vector<4x16xf32> to vector<4x16x1xf32>
    %82 = tpu.reciprocal %81 {approx = true} : vector<4x16x1xf32> -> vector<4x16x1xf32>
    %83 = vector.broadcast %82 : vector<4x16x1xf32> to vector<4x16x16xf32>
    %84 = arith.mulf %79, %83 : vector<4x16x16xf32>
    "tpu.trace_start"() <{level = 10 : i32, message = "bnm,bmd->bnd"}> : () -> ()
    %cst_38 = arith.constant dense<0.000000e+00> : vector<4x16x8xf32>
    %85 = tpu.matmul %84, %71, %cst_38 {dimension_numbers = #tpu.dot_dimension_numbers<[2], [1], [1], [2], [0, 0, 0, 1, 1, 2], [0], [0]>} : vector<4x16x16xf32>, vector<4x16x8xf32>, vector<4x16x8xf32> -> vector<4x16x8xf32>
    "tpu.trace_stop"() : () -> ()
    %86 = vector.extract_strided_slice %32 {offsets = [0, 0, 24], sizes = [4, 16, 8], strides = [1, 1, 1]} : vector<4x16x32xf32> to vector<4x16x8xf32>
    %87 = vector.extract_strided_slice %33 {offsets = [0, 0, 24], sizes = [4, 16, 8], strides = [1, 1, 1]} : vector<4x16x32xf32> to vector<4x16x8xf32>
    %88 = vector.extract_strided_slice %34 {offsets = [0, 0, 24], sizes = [4, 16, 8], strides = [1, 1, 1]} : vector<4x16x32xf32> to vector<4x16x8xf32>
    "tpu.trace_start"() <{level = 10 : i32, message = "bnd,bmd->bnm"}> : () -> ()
    %cst_39 = arith.constant dense<0.000000e+00> : vector<4x16x16xf32>
    %89 = tpu.matmul %86, %87, %cst_39 {dimension_numbers = #tpu.dot_dimension_numbers<[2], [2], [1], [1], [0, 0, 0, 1, 1, 1], [0], [0]>} : vector<4x16x8xf32>, vector<4x16x8xf32>, vector<4x16x16xf32> -> vector<4x16x16xf32>
    "tpu.trace_stop"() : () -> ()
    %cst_40 = arith.constant 0.353553385 : f32
    %90 = vector.broadcast %cst_40 : f32 to vector<4x16x16xf32>
    %91 = arith.mulf %89, %90 : vector<4x16x16xf32>
    %cst_41 = arith.constant dense<0xFF800000> : vector<4x16xf32>
    %92 = vector.multi_reduction <maximumf>, %91, %cst_41 [2] : vector<4x16x16xf32> to vector<4x16xf32>
    %93 = vector.shape_cast %92 : vector<4x16xf32> to vector<4x16x1xf32>
    %94 = vector.broadcast %93 : vector<4x16x1xf32> to vector<4x16x16xf32>
    %95 = arith.subf %91, %94 : vector<4x16x16xf32>
    %96 = math.exp %95 : vector<4x16x16xf32>
    %cst_42 = arith.constant dense<0.000000e+00> : vector<4x16xf32>
    %97 = vector.multi_reduction <add>, %96, %cst_42 [2] : vector<4x16x16xf32> to vector<4x16xf32>
    %98 = vector.shape_cast %97 : vector<4x16xf32> to vector<4x16x1xf32>
    %99 = tpu.reciprocal %98 {approx = true} : vector<4x16x1xf32> -> vector<4x16x1xf32>
    %100 = vector.broadcast %99 : vector<4x16x1xf32> to vector<4x16x16xf32>
    %101 = arith.mulf %96, %100 : vector<4x16x16xf32>
    "tpu.trace_start"() <{level = 10 : i32, message = "bnm,bmd->bnd"}> : () -> ()
    %cst_43 = arith.constant dense<0.000000e+00> : vector<4x16x8xf32>
    %102 = tpu.matmul %101, %88, %cst_43 {dimension_numbers = #tpu.dot_dimension_numbers<[2], [1], [1], [2], [0, 0, 0, 1, 1, 2], [0], [0]>} : vector<4x16x16xf32>, vector<4x16x8xf32>, vector<4x16x8xf32> -> vector<4x16x8xf32>
    "tpu.trace_stop"() : () -> ()
    %103 = tpu.concatenate %51, %68, %85, %102 in 2 : vector<4x16x8xf32>, vector<4x16x8xf32>, vector<4x16x8xf32>, vector<4x16x8xf32> -> vector<4x16x32xf32>
    %104 = vector.shape_cast %103 : vector<4x16x32xf32> to vector<64x32xf32>
    %c0_44 = arith.constant 0 : index
    %c0_45 = arith.constant 0 : index
    %105 = vector.load %arg9[%c0_44, %c0_45] : memref<32x24xf32, #tpu.memory_space<vmem>>, vector<32x24xf32>
    %cst_46 = arith.constant dense<0.000000e+00> : vector<64x24xf32>
    %106 = tpu.matmul %104, %105, %cst_46 {dimension_numbers = #tpu.dot_dimension_numbers<[1], [0], [0], [1], [0, 0, 1, 1], [], []>} : vector<64x32xf32>, vector<32x24xf32>, vector<64x24xf32> -> vector<64x24xf32>
    %107 = vector.broadcast %6 : vector<1x24xf32> to vector<64x24xf32>
    %108 = arith.addf %106, %107 : vector<64x24xf32>
    %109 = arith.addf %108, %14 : vector<64x24xf32>
    %cst_47 = arith.constant 0.000000e+00 : f32
    %110 = vector.broadcast %cst_47 : f32 to vector<64x24xf32>
    %111 = arith.maximumf %109, %110 : vector<64x24xf32>
    %c0_48 = arith.constant 0 : index
    %c0_49 = arith.constant 0 : index
    %112 = vector.load %arg10[%c0_48, %c0_49] : memref<24x24xf32, #tpu.memory_space<vmem>>, vector<24x24xf32>
    %cst_50 = arith.constant dense<0.000000e+00> : vector<64x24xf32>
    %113 = tpu.matmul %111, %112, %cst_50 {dimension_numbers = #tpu.dot_dimension_numbers<[1], [0], [0], [1], [0, 0, 1, 1], [], []>} : vector<64x24xf32>, vector<24x24xf32>, vector<64x24xf32> -> vector<64x24xf32>
    %114 = vector.broadcast %7 : vector<1x24xf32> to vector<64x24xf32>
    %115 = arith.addf %113, %114 : vector<64x24xf32>
    %cst_51 = arith.constant 0.000000e+00 : f32
    %116 = vector.broadcast %cst_51 : f32 to vector<64x24xf32>
    %117 = arith.maximumf %115, %116 : vector<64x24xf32>
    %c0_52 = arith.constant 0 : index
    %c0_53 = arith.constant 0 : index
    %118 = vector.load %arg11[%c0_52, %c0_53] : memref<24x24xf32, #tpu.memory_space<vmem>>, vector<24x24xf32>
    %cst_54 = arith.constant dense<0.000000e+00> : vector<64x24xf32>
    %119 = tpu.matmul %117, %118, %cst_54 {dimension_numbers = #tpu.dot_dimension_numbers<[1], [0], [0], [1], [0, 0, 1, 1], [], []>} : vector<64x24xf32>, vector<24x24xf32>, vector<64x24xf32> -> vector<64x24xf32>
    %120 = vector.broadcast %8 : vector<1x24xf32> to vector<64x24xf32>
    %121 = arith.addf %119, %120 : vector<64x24xf32>
    %cst_55 = arith.constant 0.000000e+00 : f32
    %122 = vector.broadcast %cst_55 : f32 to vector<64x24xf32>
    %123 = arith.maximumf %121, %122 : vector<64x24xf32>
    %124 = arith.addf %111, %123 : vector<64x24xf32>
    %cst_56 = arith.constant 0.000000e+00 : f32
    %125 = vector.broadcast %cst_56 : f32 to vector<64x24xf32>
    %126 = arith.maximumf %124, %125 : vector<64x24xf32>
    %127 = vector.shape_cast %126 : vector<64x24xf32> to vector<4x16x24xf32>
    %cst_57 = arith.constant dense<0xFF800000> : vector<4x24xf32>
    %128 = vector.multi_reduction <maximumf>, %127, %cst_57 [1] : vector<4x16x24xf32> to vector<4x24xf32>
    %c0_58 = arith.constant 0 : index
    %c0_59 = arith.constant 0 : index
    %c0_60 = arith.constant 0 : index
    %129 = vector.load %arg13[%c0_58, %c0_59, %c0_60] : memref<1x4x24xf32, #tpu.memory_space<vmem>>, vector<1x4x24xf32>
    %130 = vector.shape_cast %129 : vector<1x4x24xf32> to vector<4x24xf32>
    %131 = vector.shape_cast %128 : vector<4x24xf32> to vector<1x4x24xf32>
    tpu.vector_store %arg13[%c0_58, %c0_59, %c0_60], %131 {strides = array<i32>} : memref<1x4x24xf32, #tpu.memory_space<vmem>>, vector<1x4x24xf32>,
    return
  }
  func.func @transform_0(%arg0: i32) -> (i32, i32) {
    %c0_i32 = arith.constant 0 : i32
    %c0_i32_0 = arith.constant 0 : i32
    return %arg0, %c0_i32 : i32, i32
  }
  func.func @transform_1(%arg0: i32) -> (i32, i32) {
    %c0_i32 = arith.constant 0 : i32
    %c0_i32_0 = arith.constant 0 : i32
    return %arg0, %c0_i32 : i32, i32
  }
  func.func @transform_2(%arg0: i32) -> (i32, i32) {
    %c0_i32 = arith.constant 0 : i32
    %c0_i32_0 = arith.constant 0 : i32
    %c0_i32_1 = arith.constant 0 : i32
    return %c0_i32, %c0_i32_0 : i32, i32
  }
  func.func @transform_3(%arg0: i32) -> (i32, i32) {
    %c0_i32 = arith.constant 0 : i32
    %c0_i32_0 = arith.constant 0 : i32
    %c0_i32_1 = arith.constant 0 : i32
    return %c0_i32, %c0_i32_0 : i32, i32
  }
  func.func @transform_4(%arg0: i32) -> (i32, i32) {
    %c0_i32 = arith.constant 0 : i32
    %c0_i32_0 = arith.constant 0 : i32
    %c0_i32_1 = arith.constant 0 : i32
    return %c0_i32, %c0_i32_0 : i32, i32
  }
  func.func @transform_5(%arg0: i32) -> (i32, i32) {
    %c0_i32 = arith.constant 0 : i32
    %c0_i32_0 = arith.constant 0 : i32
    %c0_i32_1 = arith.constant 0 : i32
    return %c0_i32, %c0_i32_0 : i32, i32
  }
  func.func @transform_6(%arg0: i32) -> (i32, i32) {
    %c0_i32 = arith.constant 0 : i32
    %c0_i32_0 = arith.constant 0 : i32
    %c0_i32_1 = arith.constant 0 : i32
    return %c0_i32, %c0_i32_0 : i32, i32
  }
  func.func @transform_7(%arg0: i32) -> (i32, i32) {
    %c0_i32 = arith.constant 0 : i32
    %c0_i32_0 = arith.constant 0 : i32
    %c0_i32_1 = arith.constant 0 : i32
    return %c0_i32, %c0_i32_0 : i32, i32
  }
  func.func @transform_8(%arg0: i32) -> (i32, i32) {
    %c0_i32 = arith.constant 0 : i32
    %c0_i32_0 = arith.constant 0 : i32
    %c0_i32_1 = arith.constant 0 : i32
    return %c0_i32, %c0_i32_0 : i32, i32
  }
  func.func @transform_9(%arg0: i32) -> (i32, i32) {
    %c0_i32 = arith.constant 0 : i32
    %c0_i32_0 = arith.constant 0 : i32
    %c0_i32_1 = arith.constant 0 : i32
    return %c0_i32, %c0_i32_0 : i32, i32
  }
  func.func @transform_10(%arg0: i32) -> (i32, i32) {
    %c0_i32 = arith.constant 0 : i32
    %c0_i32_0 = arith.constant 0 : i32
    %c0_i32_1 = arith.constant 0 : i32
    return %c0_i32, %c0_i32_0 : i32, i32
  }
  func.func @transform_11(%arg0: i32) -> (i32, i32) {
    %c0_i32 = arith.constant 0 : i32
    %c0_i32_0 = arith.constant 0 : i32
    %c0_i32_1 = arith.constant 0 : i32
    return %c0_i32, %c0_i32_0 : i32, i32
  }
  func.func @transform_12(%arg0: i32) -> (i32, i32, i32) {
    %c0_i32 = arith.constant 0 : i32
    %c0_i32_0 = arith.constant 0 : i32
    %c0_i32_1 = arith.constant 0 : i32
    return %arg0, %c0_i32, %c0_i32_0 : i32, i32, i32
  }
}

</mosaic_0001>

<bundles_post_ra>
// kernel: tpu_custom_call.1
= control target key start
LH: loop header
LB: loop body
LE: loop exit
PB: predicated region body
PF: predicated region fallthrough
CT: control target
= control target key end

     0   :  { %s7567_s0 = inlined_call_operand.vmem [shape: f32[128,6], index: 0, kind: input, shape index: {}]   ;;  %s7568_s1 = inlined_call_operand.vmem [shape: f32[128,10], index: 1, kind: input, shape index: {}]   ;;  %s7569_s2 = inlined_call_operand.vmem [shape: f32[6,24], index: 2, kind: input, shape index: {}]   ;;  %s7570_s3 = inlined_call_operand.vmem [shape: f32[10,40], index: 3, kind: input, shape index: {}]   ;;  %s7571_s4 = inlined_call_operand.vmem [shape: f32[40,24], index: 4, kind: input, shape index: {}]   ;;  %s7572_s5 = inlined_call_operand.vmem [shape: f32[24,32], index: 5, kind: input, shape index: {}]   ;;  %s7573_s6 = inlined_call_operand.vmem [shape: f32[24,32], index: 6, kind: input, shape index: {}]   ;;  %s7574_s7 = inlined_call_operand.vmem [shape: f32[24,32], index: 7, kind: input, shape index: {}]   ;;  %s7575_s8 = inlined_call_operand.vmem [shape: f32[32,24], index: 8, kind: input, shape index: {}]   ;;  %s7576_s9 = inlined_call_operand.vmem [shape: f32[24,24], index: 9, kind: input, shape index: {}]   ;;  %s7577_s10 = inlined_call_operand.vmem [shape: f32[24,24], index: 10, kind: input, shape index: {}]   ;;  %s7578_s11 = inlined_call_operand.vmem [shape: f32[8,128], index: 11, kind: input, shape index: {}]   ;;  %s7579_s12 = inlined_call_operand.hbm [shape: f32[2,4,24], index: 12, kind: output, shape index: {}]  }
   0x1   :  { %7588 = sst [smem:[#allocation5_spill]] %s7567_s0 }
   0x2   :  { %7589 = sst [smem:[#allocation6_spill]] %s7569_s2 }
   0x3   :  { %17 = vsyncpa [#allocation3], 0 }
   0x4   :  { %19 = vsyncpa [#allocation3 + $0x1], 0  ;;  %s6594_s21 = smov 0   ;;  %s6596_s22 = smov 0  }
   0x5   :  { %s6598_s23 = smov 0   ;;  %s6600_s24 = smov 0  }
   0x6 LB: > { %s6615_s25 = sadd.s32 4294967295, %s6519_s24   ;;  %s5158_s26 = sadd.s32 4294967294, %s6519_s24   ;;  %s6519_s24 = sphi %s6600_s24, %s7607_s24   ;;  %s6515_s23 = sphi %s6598_s23, %s7606_s23   ;;  %s6511_s22 = sphi %s6596_s22, %s7605_s22   ;;  %s6507_s21 = sphi %s6594_s21, %s7604_s21  }
   0x7   : > { %s6619_s27 = sadd.s32 1, %s6519_s24   ;;  %s294_s28 = sadd.s32 1, %s6515_s23 }
   0x8   : > { %s291_s29 = ssub.s32 %s6519_s24, %s6619_s27  ;;  %p304_p0 = scmp.ne.s32.totalorder %s6515_s23, %s6511_s22 }
   0x9   : > { %p292_p1 = scmp.eq.s32.totalorder %s291_s29, 0  ;;  %p305_p2 = scmp.eq.s32.totalorder %s6615_s25, 1 }
   0xa   : > { %p310_p3 = scmp.ne.s32.totalorder %s6511_s22, %s6507_s21  ;;  %p311_p4 = scmp.eq.s32.totalorder %s5158_s26, 1 }
   0xb   : > { %s6630_s30 = scalar_select %p292_p1, %s6515_s23, %s294_s28  }
   0xc   : > { %p6632_p5 = por %p305_p2, %p304_p0  ;;  %p6636_p6 = por %p311_p4, %p310_p3 }
   0xd   : > { %p5161_p7 = scmp.ge.s32.totalorder %s6519_s24, 1  ;;  %p377_p8 = scmp.lt.s32.totalorder %s6519_s24, 3 }
   0xf   : > { %p378_p9 = pnand %p5161_p7, %p377_p8 }
  0x10   : > { %v600_v0 = vld [vmem:[%s7570_s3] sm:$0xff] (!%p378_p9)  ;;  %v601_v1 = vld [vmem:[%s7570_s3 + $0x8] sm:$0x3] (!%p378_p9)  ;;  %vm631_vm0 = vcmask (!%p378_p9), 1041408   ;;  %s5163_s19 = sshll.u32 (!%p378_p9), %s6615_s25, 3  ;;  %vm6521_vm1 = vmmov (!%p378_p9), 1   ;;  %v454_v27 = vlaneseq (!%p378_p9) }
  0x11   : > { %381 = sbr.rel (%p378_p9) target bundleno = 3916 (0xf4c), region = 68  ;;  %v5954_v2 = vpack.c.bf16 (!%p378_p9), %v601_v1, %v600_v0  ;;  %vm5955_vm2 = vmpackc.low (!%p378_p9), %vm631_vm0, %vm6521_vm1  ;;  %p425_p10 = scmp.lt.s32.totalorder (!%p378_p9), %s5163_s19, 15  ;;  %vm483_vm3 = vcmask (!%p378_p9), 1045504   ;;  %v748_v4 = vld [vmem:[%s7571_s4] sm:$0xff] (!%p378_p9)  ;;  %v749_v5 = vld [vmem:[%s7571_s4 + $0x8] sm:$0xff] (!%p378_p9)  ;;  %vm606_vm4 = vcmask (!%p378_p9), 80896  }
  0x12   : > { %s7592_s2 = sld [smem:[#allocation6_spill]] (!%p378_p9)  ;;  %v5960_v6 = vpack.c.bf16 (!%p378_p9), %v749_v5, %v748_v4  ;;  %s7593_s0 = sld [smem:[#allocation5_spill]] (!%p378_p9)  ;;  %vm458_vm5 = vcmask (!%p378_p9), 48128   ;;  %v750_v21 = vld [vmem:[%s7571_s4 + $0x10] sm:$0xff] (!%p378_p9)  ;;  %v751_v22 = vld [vmem:[%s7571_s4 + $0x18] sm:$0xff] (!%p378_p9)  ;;  %v752_v26 = vld [vmem:[%s7571_s4 + $0x20] sm:$0xff] (!%p378_p9) }
  0x13   : > { %5956 = vmatprep.subr.msk.bf16.mxu1 (!%p378_p9), %vm5955_vm2, %v5954_v2  ;;  %v5964_v23 = vpack.c.bf16 (!%p378_p9), %v751_v22, %v750_v21  ;;  %v6699_v28 = vshrl.u32 (!%p378_p9), %v454_v27, 7  ;;  %v6705_v30 = vld [vmem:[%s7578_s11] sm:$0xff] (!%p378_p9)  ;;  %vm757_vm6 = vcmask (!%p378_p9), 326656   ;;  %v896_v1 = vld [vmem:[%s7572_s5 + $0x8] sm:$0xff] (!%p378_p9)  ;;  %vm898_vm7 = vcmask (!%p378_p9), 195584   ;;  %s6522_s20 = smov (!%p378_p9), 120  }
  0x14   : > { %5959 = vmatpush3.bf16.msk.msra.mxu1 (!%p378_p9), %vm5955_vm2, %v5954_v2  ;;  %v895_v0 = vld [vmem:[%s7572_s5] sm:$0xff] (!%p378_p9)  ;;  %v1029_v4 = vld [vmem:[%s7573_s6 + $0x8] sm:$0xff] (!%p378_p9)  ;;  %vm1244_vm8 = vcmask (!%p378_p9), 64512   ;;  %vm1601_vm10 = vcmask (!%p378_p9), 130048   ;;  %s6524_s28 = smov (!%p378_p9), 104   ;;  %vm4574_vm11 = vcmask (!%p378_p9), 261120  }
  0x15   : > { %6156 = vmatprep.subr.bf16.mxu1 (!%p378_p9), %v5960_v6  ;;  %v604_v29 = vsub.s32 (!%p378_p9), 1, %v6699_v28  ;;  %v1028_v2 = vld [vmem:[%s7573_s6] sm:$0xff] (!%p378_p9)  ;;  %vm6823_vm9 = vmpackc.low (!%p378_p9), %vm1244_vm8, %vm1244_vm8  ;;  %vm5064_vm12 = vcmask (!%p378_p9), 1041409   ;;  %vm5066_vm13 = vcmask (!%p378_p9), 1042434   ;;  %vm5068_vm14 = vcmask (!%p378_p9), 1043459  }
  0x16   : > { %v5972_v5 = vpack.c.bf16 (!%p378_p9), %v1029_v4, %v1028_v2  ;;  %vm5071_vm15 = vcmask (!%p378_p9), 191488  }
  0x17   : > { %v605_v31 = vrot.slane (!%p378_p9), %v6705_v30, %v604_v29 }
  0x18   : > { %v453_v3 = vld [vmem:[%s7592_s2] sm:$0x3f]  ;;  %s7609_s19 = smov (!%p425_p10, %s5163_s19), 15  ;;  %s6526_s2 = smov 16  }
  0x19   : > { %5568 = vmatprep.subr.msk.mxu0 %vm483_vm3, %v453_v3  ;;  %s5164_s17 = sshll.u32 %s7609_s19, 3 }
  0x1a   : > { %5569 = vmatpush3.msk.msra.mxu0 %vm483_vm3, %v453_v3  ;;  %s434_s26 = scalar_lea.vmem %s7568_s1, %s5164_s17  ;;  %s6664_s29 = scalar_lea.vmem %s7593_s0, %s5164_s17  ;;  %v5968_v3 = vpack.c.bf16 %v896_v1, %v895_v0 }
  0x1b   : > { %5961 = vmatprep.subr.bf16.mxu0 %v5960_v6  ;;  %v444_v7 = vld [vmem:[%s434_s26] sm:$0xff]  ;;  %v445_v8 = vld [vmem:[%s434_s26 + $0x8] sm:$0xff]  ;;  %v446_v9 = vld [vmem:[%s434_s26 + $0x10] sm:$0xff]  ;;  %s421_s17 = sand.u32 1, %s6511_s22  }
  0x1c   : > { %5586 = vmatprep.mubr.msk.f32.mxu1 %vm606_vm4, %v444_v7  ;;  %v436_v10 = vld [vmem:[%s6664_s29] sm:$0xff]  ;;  %v447_v11 = vld [vmem:[%s434_s26 + $0x18] sm:$0xff]  ;;  %v437_v12 = vld [vmem:[%s6664_s29 + $0x8] sm:$0xff]  ;;  %s5162_s18 = sshll.u32 %s421_s17, 2  ;;  %s5074_s15 = scalar_lea.sflag [#allocation3], %s421_s17 }
  0x1d   : > { %5587 = vmatmul.mubr.msk.f32.vlgmr.msra.gmra.mrb[0].mxu1 %vm606_vm4, %v445_v8  ;;  %5570 = vmatprep.mubr.msk.f32.mxu0 %vm458_vm5, %v436_v10  ;;  %v438_v13 = vld [vmem:[%s6664_s29 + $0x10] sm:$0xff]  ;;  %v448_v14 = vld [vmem:[%s434_s26 + $0x20] sm:$0xff]  ;;  %v439_v15 = vld [vmem:[%s6664_s29 + $0x18] sm:$0xff] }
  0x1e   : > { %5589 = vmatprep.mubr.msk.f32.mxu1 %vm606_vm4, %v446_v9  ;;  %5571 = vmatmul.mubr.msk.f32.vlgmr.msra.gmra.mrb[0].mxu0 %vm458_vm5, %v437_v12  ;;  %v440_v16 = vld [vmem:[%s6664_s29 + $0x20] sm:$0xff]  ;;  %v449_v17 = vld [vmem:[%s434_s26 + $0x28] sm:$0xff]  ;;  %v450_v18 = vld [vmem:[%s434_s26 + $0x30] sm:$0xff]  ;;  %v755_v12 = vsub.s32 2, %v6699_v28 }
  0x1f   : > { %6159 = vmatpush3.bf16.msra.mxu1 %v5960_v6  ;;  %5573 = vmatprep.mubr.msk.f32.mxu0 %vm458_vm5, %v438_v13  ;;  %v441_v19 = vld [vmem:[%s6664_s29 + $0x28] sm:$0xff]  ;;  %v451_v20 = vld [vmem:[%s434_s26 + $0x38] sm:$0xff]  ;;  %v442_v24 = vld [vmem:[%s6664_s29 + $0x30] sm:$0xff]  ;;  %s6523_s26 = smov 112  }
  0x20   : > { %5963 = vmatpush3.bf16.msra.mxu0 %v5960_v6  ;;  %v443_v25 = vld [vmem:[%s6664_s29 + $0x38] sm:$0xff]  ;;  %6157 = vmatprep.subr.bf16.mxu1 %v5964_v23  ;;  %v897_v6 = vld [vmem:[%s7572_s5 + $0x10] sm:$0xff]  ;;  %v1136_v8 = vld [vmem:[%s7574_s7] sm:$0xff]  ;;  %s6525_s29 = smov 8  }
  0x21   : > { %5590 = vmatmul.mubr.msk.f32.gmra.mrb[2].mxu1 %vm606_vm4, %v447_v11  ;;  %5965 = vmatprep.subr.bf16.mxu0 %v5964_v23  ;;  %v1030_v7 = vld [vmem:[%s7573_s6 + $0x10] sm:$0xff]  ;;  %v1137_v9 = vld [vmem:[%s7574_s7 + $0x8] sm:$0xff]  ;;  %v456_v11 = vsub.s32 0, %v6699_v28 }
  0x22   : > { %5592 = vmatprep.mubr.msk.f32.mxu1 %vm606_vm4, %v448_v14  ;;  %5574 = vmatmul.mubr.msk.f32.gmra.mrb[2].mxu0 %vm458_vm5, %v439_v15  ;;  %v5976_v10 = vpack.c.bf16 %v1137_v9, %v1136_v8  ;;  %v756_v14 = vrot.slane %v6705_v30, %v755_v12 }
  0x23   : > { %5576 = vmatprep.mubr.msk.f32.mxu0 %vm458_vm5, %v440_v16  ;;  %6160 = vmatpush3.bf16.msra.mxu1 %v5964_v23  ;;  %v457_v13 = vrot.slane %v6705_v30, %v456_v11 }
  0x24   : > { %5967 = vmatpush3.bf16.msra.mxu0 %v5964_v23  ;;  %6158 = vmatprep.subr.mxu1 %v752_v26 }
  0x25   : > { %5593 = vmatmul.mubr.msk.f32.gmra.mrb[4].mxu1 %vm606_vm4, %v449_v17  ;;  %5606 = vmatprep.subr.mxu0 %v752_v26 }
  0x26   : > { %5595 = vmatprep.mubr.msk.f32.mxu1 %vm606_vm4, %v450_v18  ;;  %5577 = vmatmul.mubr.msk.f32.gmra.mrb[4].mxu0 %vm458_vm5, %v441_v19 }
  0x27   : > { %5579 = vmatprep.mubr.msk.f32.mxu0 %vm458_vm5, %v442_v24  ;;  %6161 = vmatpush3.msra.mxu1 %v752_v26 }
  0x28   : > { %5607 = vmatpush3.msra.mxu0 %v752_v26  ;;  %5969 = vmatprep.subr.bf16.mxu1 %v5968_v3 }
  0x29   : > { %5596 = vmatmul.mubr.msk.f32.gmra.mrb[6].mxu1 %vm606_vm4, %v451_v20  ;;  %5973 = vmatprep.subr.bf16.mxu0 %v5972_v5 }
  0x2a   : > { %5580 = vmatmul.mubr.msk.f32.gmra.mrb[6].mxu0 %vm458_vm5, %v443_v25 }
  0xf0   : > { %v5588_v32 = vpop.f32.mrb[0].mxu1 }
  0xf1   : > { %v707_v33 = vadd.f32 %v5588_v32, %v605_v31  ;;  %v701_v34 = vpop.f32.mrb[1].mxu1  ;;  %v5572_v36 = vpop.f32.mrb[0].mxu0 }
  0xf2   : > { %v702_v35 = vadd.f32 %v701_v34, %v605_v31  ;;  %v553_v37 = vpop.f32.mrb[1].mxu0  ;;  %v6750_v16 = vadd.f32 %v5572_v36, %v457_v13  ;;  %v1138_v34 = vld [vmem:[%s7574_s7 + $0x10] sm:$0xff] }
  0xf3   : > { %v741_v40 = vmax.f32 %v707_v33, 0.0  ;;  %v6748_v15 = vadd.f32 %v553_v37, %v457_v13 }
  0xf4   : > { %v740_v38 = vmax.f32 %v702_v35, 0.0  ;;  %v5591_v39 = vpop.f32.mrb[2].mxu1  ;;  %v7587_v23 = vmax.f32 %v6750_v16, 0.0 }
  0xf5   : > { %v717_v41 = vadd.f32 %v5591_v39, %v605_v31  ;;  %v711_v42 = vpop.f32.mrb[3].mxu1  ;;  %v5575_v44 = vpop.f32.mrb[2].mxu0  ;;  %v7586_v20 = vmax.f32 %v6748_v15, 0.0 }
  0xf6   : > { %v712_v43 = vadd.f32 %v711_v42, %v605_v31  ;;  %5608 = vmatprep.mubr.msk.f32.mxu0 %vm757_vm6, %v740_v38  ;;  %v563_v45 = vpop.f32.mrb[3].mxu0  ;;  %v6756_v24 = vadd.f32 %v5575_v44, %v457_v13 }
  0xf7   : > { %5609 = vmatmul.mubr.msk.f32.vlgmr.msra.gmra.mrb[8].mxu0 %vm757_vm6, %v741_v40  ;;  %v743_v48 = vmax.f32 %v717_v41, 0.0  ;;  %v6753_v21 = vadd.f32 %v563_v45, %v457_v13 }
  0xf8   : > { %v742_v46 = vmax.f32 %v712_v43, 0.0  ;;  %v5594_v47 = vpop.f32.mrb[4].mxu1  ;;  %5975 = vmatpush3.bf16.msra.mxu0 %v5972_v5  ;;  %v7585_v35 = vmax.f32 %v6756_v24, 0.0 }
  0xf9   : > { %v727_v49 = vadd.f32 %v5594_v47, %v605_v31  ;;  %v721_v50 = vpop.f32.mrb[5].mxu1  ;;  %v6711_v52 = vpop.f32.mrb[4].mxu0  ;;  %5642 = vmatprep.subr.mxu0 %v1030_v7 }
  0xfa   : > { %v722_v51 = vadd.f32 %v721_v50, %v605_v31  ;;  %5611 = vmatprep.mubr.msk.f32.mxu0 %vm757_vm6, %v742_v46  ;;  %v573_v54 = vpop.f32.mrb[5].mxu0  ;;  %v6772_v36 = vadd.f32 %v6711_v52, %v457_v13 }
  0xfb   : > { %v745_v53 = vmax.f32 %v727_v49, 0.0  ;;  %5612 = vmatmul.mubr.msk.f32.gmra.mrb[10].mxu0 %vm757_vm6, %v743_v48  ;;  %v6763_v32 = vadd.f32 %v573_v54, %v457_v13 }
  0xfc   : > { %v744_v55 = vmax.f32 %v722_v51, 0.0  ;;  %v5597_v56 = vpop.f32.mrb[6].mxu1  ;;  %5643 = vmatpush3.msra.mxu0 %v1030_v7  ;;  %v7583_v45 = vmax.f32 %v6772_v36, 0.0 }
  0xfd   : > { %v737_v57 = vadd.f32 %v5597_v56, %v605_v31  ;;  %v731_v58 = vpop.f32.mrb[7].mxu1  ;;  %v6718_v62 = vpop.f32.mrb[6].mxu0  ;;  %v7582_v42 = vmax.f32 %v6763_v32, 0.0 }
  0xfe   : > { %v732_v59 = vadd.f32 %v731_v58, %v605_v31  ;;  %5614 = vmatprep.mubr.msk.f32.mxu1 %vm757_vm6, %v744_v55  ;;  %v583_v63 = vpop.f32.mrb[7].mxu0  ;;  %v7584_v31 = vmax.f32 %v6753_v21, 0.0  ;;  %v6787_v46 = vadd.f32 %v6718_v62, %v457_v13 }
  0xff   : > { %v747_v60 = vmax.f32 %v737_v57, 0.0  ;;  %5615 = vmatmul.mubr.msk.f32.vlgmr.msra.gmra.mrb[8].mxu1 %vm757_vm6, %v745_v53  ;;  %v6781_v43 = vadd.f32 %v583_v63, %v457_v13 }
 0x100   : > { %v746_v61 = vmax.f32 %v732_v59, 0.0  ;;  %5971 = vmatpush3.bf16.msra.mxu1 %v5968_v3  ;;  %v7581_v54 = vmax.f32 %v6787_v46, 0.0 }
 0x101   : > { %5624 = vmatprep.subr.mxu1 %v897_v6  ;;  %v7580_v52 = vmax.f32 %v6781_v43, 0.0 }
 0x102   : > { %5617 = vmatprep.mubr.msk.f32.mxu1 %vm757_vm6, %v746_v61 }
 0x103   : > { %5618 = vmatmul.mubr.msk.f32.gmra.mrb[10].mxu1 %vm757_vm6, %v747_v60 }
 0x104   : > { %5625 = vmatpush3.msra.mxu1 %v897_v6 }
 0x105   : > { %5977 = vmatprep.subr.bf16.mxu1 %v5976_v10 }
 0x1ca   : > { %v5610_v17 = vpop.f32.mrb[8].mxu0 }
 0x1cb   : > { %v854_v18 = vadd.f32 %v5610_v17, %v756_v14  ;;  %v848_v19 = vpop.f32.mrb[9].mxu0 }
 0x1cc   : > { %v849_v22 = vadd.f32 %v848_v19, %v756_v14 }
 0x1cd   : > { %v888_v27 = vadd.f32 %v854_v18, %v7587_v23 }
 0x1ce   : > { %v887_v25 = vadd.f32 %v849_v22, %v7586_v20  ;;  %v5613_v26 = vpop.f32.mrb[10].mxu0 }
 0x1cf   : > { %v864_v29 = vadd.f32 %v5613_v26, %v756_v14  ;;  %v858_v30 = vpop.f32.mrb[11].mxu0 }
 0x1d0   : > { %v859_v33 = vadd.f32 %v858_v30, %v756_v14  ;;  %5626 = vmatprep.mubr.msk.f32.mxu1 %vm898_vm7, %v887_v25  ;;  %5644 = vmatprep.mubr.msk.f32.mxu0 %vm898_vm7, %v887_v25 }
 0x1d1   : > { %5627 = vmatmul.mubr.msk.f32.vlgmr.msra.gmra.mrb[12].mxu1 %vm898_vm7, %v888_v27  ;;  %5645 = vmatmul.mubr.msk.f32.vlgmr.msra.gmra.mrb[12].mxu0 %vm898_vm7, %v888_v27  ;;  %v890_v39 = vadd.f32 %v864_v29, %v7585_v35 }
 0x1d2   : > { %v889_v37 = vadd.f32 %v859_v33, %v7584_v31  ;;  %v5616_v38 = vpop.f32.mrb[8].mxu1  ;;  %5979 = vmatpush3.bf16.msra.mxu1 %v5976_v10 }
 0x1d3   : > { %v874_v40 = vadd.f32 %v5616_v38, %v756_v14  ;;  %v868_v41 = vpop.f32.mrb[9].mxu1  ;;  %5660 = vmatprep.subr.mxu1 %v1138_v34 }
 0x1d4   : > { %v869_v44 = vadd.f32 %v868_v41, %v756_v14  ;;  %5629 = vmatprep.mubr.msk.f32.mxu1 %vm898_vm7, %v889_v37  ;;  %5647 = vmatprep.mubr.msk.f32.mxu0 %vm898_vm7, %v889_v37 }
 0x1d5   : > { %5630 = vmatmul.mubr.msk.f32.gmra.mrb[14].mxu1 %vm898_vm7, %v890_v39  ;;  %5648 = vmatmul.mubr.msk.f32.gmra.mrb[14].mxu0 %vm898_vm7, %v890_v39  ;;  %v892_v49 = vadd.f32 %v874_v40, %v7583_v45 }
 0x1d6   : > { %v891_v47 = vadd.f32 %v869_v44, %v7582_v42  ;;  %v5619_v48 = vpop.f32.mrb[10].mxu1  ;;  %5661 = vmatpush3.msra.mxu1 %v1138_v34 }
 0x1d7   : > { %v884_v50 = vadd.f32 %v5619_v48, %v756_v14  ;;  %v878_v51 = vpop.f32.mrb[11].mxu1 }
 0x1d8   : > { %v879_v53 = vadd.f32 %v878_v51, %v756_v14  ;;  %5632 = vmatprep.mubr.msk.f32.mxu1 %vm898_vm7, %v891_v47  ;;  %5650 = vmatprep.mubr.msk.f32.mxu0 %vm898_vm7, %v891_v47 }
 0x1d9   : > { %5633 = vmatmul.mubr.msk.f32.gmra.mrb[16].mxu1 %vm898_vm7, %v892_v49  ;;  %5651 = vmatmul.mubr.msk.f32.gmra.mrb[16].mxu0 %vm898_vm7, %v892_v49  ;;  %v894_v56 = vadd.f32 %v884_v50, %v7581_v54 }
 0x1da   : > { %v893_v55 = vadd.f32 %v879_v53, %v7580_v52 }
 0x1dc   : > { %5635 = vmatprep.mubr.msk.f32.mxu1 %vm898_vm7, %v893_v55  ;;  %5653 = vmatprep.mubr.msk.f32.mxu0 %vm898_vm7, %v893_v55 }
 0x1dd   : > { %5636 = vmatmul.mubr.msk.f32.gmra.mrb[18].mxu1 %vm898_vm7, %v894_v56  ;;  %5654 = vmatmul.mubr.msk.f32.gmra.mrb[18].mxu0 %vm898_vm7, %v894_v56 }
 0x1de   : > { %5662 = vmatprep.mubr.msk.f32.mxu1 %vm898_vm7, %v887_v25 }
 0x1e1   : > { %5663 = vmatmul.mubr.msk.f32.vlgmr.msra.gmra.mrb[20].mxu1 %vm898_vm7, %v888_v27 }
 0x1e2   : > { %5665 = vmatprep.mubr.msk.f32.mxu1 %vm898_vm7, %v889_v37 }
 0x1e5   : > { %5666 = vmatmul.mubr.msk.f32.gmra.mrb[22].mxu1 %vm898_vm7, %v890_v39 }
 0x1e6   : > { %5668 = vmatprep.mubr.msk.f32.mxu1 %vm898_vm7, %v891_v47 }
 0x1e9   : > { %5669 = vmatmul.mubr.msk.f32.gmra.mrb[24].mxu1 %vm898_vm7, %v892_v49 }
 0x1ea   : > { %5671 = vmatprep.mubr.msk.f32.mxu1 %vm898_vm7, %v893_v55 }
 0x1ed   : > { %5672 = vmatmul.mubr.msk.f32.gmra.mrb[26].mxu1 %vm898_vm7, %v894_v56 }
 0x2a4   : > { %v6817_v57 = vpop.f32.mrb[12].mxu1  ;;  %v5646_v58 = vpop.f32.mrb[12].mxu0 }
 0x2a5   : > { %v6819_v59 = vpop.f32.mrb[13].mxu1  ;;  %v1097_v60 = vpop.f32.mrb[13].mxu0 }
 0x2a6   : > { %v5980_v62 = vpack.c.bf16 %v5646_v58, %v1097_v60  ;;  %5678 = vmatprep.mubr.msk.f32.mxu0 %vm1244_vm8, %v6819_v59  ;;  %v6829_v63 = vpack.i.bf16 %v5646_v58, %v1097_v60 }
 0x2a8   : > { %v6831_v0 = vpop.f32.mrb[14].mxu1  ;;  %v5649_v1 = vpop.f32.mrb[14].mxu0  ;;  %5982 = vmatprep.subr.msk.bf16.mxu0 %vm6823_vm9, %v5980_v62 }
 0x2a9   : > { %v6835_v2 = vpop.f32.mrb[15].mxu1  ;;  %v1107_v3 = vpop.f32.mrb[15].mxu0  ;;  %5985 = vmatpush3.bf16.xpose.msk.msra.mxu0 %vm6823_vm9, %v5980_v62 }
 0x2aa   : > { %v5986_v4 = vpack.c.bf16 %v5649_v1, %v1107_v3  ;;  %5685 = vmatprep.mubr.msk.f32.mxu1 %vm1244_vm8, %v6835_v2  ;;  %v6841_v5 = vpack.i.bf16 %v5649_v1, %v1107_v3 }
 0x2ac   : > { %v6843_v6 = vpop.f32.mrb[16].mxu1  ;;  %v5652_v7 = vpop.f32.mrb[16].mxu0  ;;  %5988 = vmatprep.subr.msk.bf16.mxu1 %vm6823_vm9, %v5986_v4 }
 0x2ad   : > { %v6847_v8 = vpop.f32.mrb[17].mxu1  ;;  %v1117_v9 = vpop.f32.mrb[17].mxu0  ;;  %5991 = vmatpush3.bf16.xpose.msk.msra.mxu1 %vm6823_vm9, %v5986_v4 }
 0x2ae   : > { %v5992_v10 = vpack.c.bf16 %v5652_v7, %v1117_v9  ;;  %v6851_v11 = vpack.i.bf16 %v5652_v7, %v1117_v9 }
 0x2b0   : > { %v6853_v12 = vpop.f32.mrb[18].mxu1  ;;  %v5655_v13 = vpop.f32.mrb[18].mxu0  ;;  %5679 = vmatmul.mubr.msk.f32.vlgmr.msra.gmra.mrb[20].mxu0 %vm1244_vm8, %v6817_v57  ;;  %5994 = vmatprep.subr.msk.bf16.mxu0 %vm6823_vm9, %v5992_v10 }
 0x2b1   : > { %v6859_v14 = vpop.f32.mrb[19].mxu1  ;;  %v1127_v17 = vpop.f32.mrb[19].mxu0  ;;  %5997 = vmatpush3.bf16.xpose.msk.msra.mxu0 %vm6823_vm9, %v5992_v10  ;;  %5692 = vmatprep.mubr.msk.f32.mxu0 %vm1244_vm8, %v6847_v8 }
 0x2b2   : > { %v5998_v18 = vpack.c.bf16 %v5655_v13, %v1127_v17  ;;  %v6865_v19 = vpack.i.bf16 %v5655_v13, %v1127_v17 }
 0x2b4   : > { %v5664_v22 = vpop.f32.mrb[20].mxu1  ;;  %5686 = vmatmul.mubr.msk.f32.vlgmr.msra.gmra.mrb[28].mxu1 %vm1244_vm8, %v6831_v0  ;;  %6000 = vmatprep.subr.msk.bf16.mxu1 %vm6823_vm9, %v5998_v18 }
 0x2b5   : > { %v1205_v25 = vpop.f32.mrb[21].mxu1  ;;  %6003 = vmatpush3.bf16.xpose.msk.msra.mxu1 %vm6823_vm9, %v5998_v18  ;;  %5699 = vmatprep.mubr.msk.f32.mxu1 %vm1244_vm8, %v6859_v14 }
 0x2b6   : > { %v6875_v26 = vpack.i.bf16 %v5664_v22, %v1205_v25  ;;  %v6004_v27 = vpack.c.bf16 %v5664_v22, %v1205_v25 }
 0x2b8   : > { %v5667_v29 = vpop.f32.mrb[22].mxu1  ;;  %5693 = vmatmul.mubr.msk.f32.vlgmr.msra.gmra.mrb[22].mxu0 %vm1244_vm8, %v6843_v6  ;;  %6005 = vmatprep.subr.bf16.mxu0 %v6004_v27 }
 0x2b9   : > { %v1215_v30 = vpop.f32.mrb[23].mxu1  ;;  %6007 = vmatpush3.bf16.msra.mxu0 %v6004_v27 }
 0x2ba   : > { %v6879_v33 = vpack.i.bf16 %v5667_v29, %v1215_v30  ;;  %v6008_v34 = vpack.c.bf16 %v5667_v29, %v1215_v30 }
 0x2bc   : > { %v5670_v37 = vpop.f32.mrb[24].mxu1  ;;  %5700 = vmatmul.mubr.msk.f32.vlgmr.msra.gmra.mrb[30].mxu1 %vm1244_vm8, %v6853_v12  ;;  %6009 = vmatprep.subr.bf16.mxu1 %v6008_v34 }
 0x2bd   : > { %v1225_v38 = vpop.f32.mrb[25].mxu1  ;;  %6011 = vmatpush3.bf16.msra.mxu1 %v6008_v34 }
 0x2be   : > { %v6883_v39 = vpack.i.bf16 %v5670_v37, %v1225_v38  ;;  %v6885_v40 = vpack.c.bf16 %v5670_v37, %v1225_v38 }
 0x2c0   : > { %v5673_v41 = vpop.f32.mrb[26].mxu1  ;;  %6013 = vmatprep.subr.bf16.mxu0 %v6885_v40 }
 0x2c1   : > { %v1235_v44 = vpop.f32.mrb[27].mxu1 }
 0x2c2   : > { %v6888_v47 = vpack.i.bf16 %v5673_v41, %v1235_v44  ;;  %v6890_v48 = vpack.c.bf16 %v5673_v41, %v1235_v44 }
 0x2c4   : > { %6017 = vmatprep.subr.bf16.mxu1 %v6890_v48 }
 0x383   : > { %v5680_v49 = vpop.f32.mrb[20].mxu0 }
 0x384   : > { %v1323_v50 = vpop.f32.mrb[21].mxu0  ;;  %v1594_v53 = vmul.f32 0.35355338, %v5680_v49 }
 0x385   : > { %v1593_v51 = vmul.f32 0.35355338, %v1323_v50 }
 0x386   : > { %v1605_v3 = vsel %vm1601_vm10, %v1594_v53, -inf }
 0x387   : > { %v5687_v55 = vpop.f32.mrb[28].mxu1  ;;  %v1602_v56 = vsel %vm1601_vm10, %v1593_v51, -inf }
 0x388   : > { %1603 = vmax.xlane.f32.xlu0 %v1602_v56  ;;  %v1410_v58 = vpop.f32.mrb[29].mxu1  ;;  %v1596_v62 = vmul.f32 0.35355338, %v5687_v55 }
 0x389   : > { %v1595_v60 = vmul.f32 0.35355338, %v1410_v58 }
 0x38a   : > { %v1611_v18 = vsel %vm1601_vm10, %v1596_v62, -inf }
 0x38b   : > { %v5694_v1 = vpop.f32.mrb[22].mxu0  ;;  %v1608_v4 = vsel %vm1601_vm10, %v1595_v60, -inf }
 0x38c   : > { %1606 = vmax.xlane.f32.xlu0 %v1605_v3  ;;  %v1497_v7 = vpop.f32.mrb[23].mxu0  ;;  %1609 = vmax.xlane.f32.xlu1 %v1608_v4  ;;  %v1598_v10 = vmul.f32 0.35355338, %v5694_v1 }
 0x38d   : > { %v1597_v9 = vmul.f32 0.35355338, %v1497_v7 }
 0x38e   : > { %v1617_v29 = vsel %vm1601_vm10, %v1598_v10, -inf }
 0x38f   : > { %v5701_v13 = vpop.f32.mrb[30].mxu1  ;;  %v1614_v17 = vsel %vm1601_vm10, %v1597_v9, -inf }
 0x390   : > { %1615 = vmax.xlane.f32.xlu0 %v1614_v17  ;;  %1612 = vmax.xlane.f32.xlu1 %v1611_v18  ;;  %v1584_v22 = vpop.f32.mrb[31].mxu1  ;;  %v1600_v27 = vmul.f32 0.35355338, %v5701_v13 }
 0x391   : > { %v1599_v25 = vmul.f32 0.35355338, %v1584_v22 }
 0x392   : > { %v1623_v34 = vsel %vm1601_vm10, %v1600_v27, -inf }
 0x393   : > { %v1620_v30 = vsel %vm1601_vm10, %v1599_v25, -inf }
 0x394   : > { %1618 = vmax.xlane.f32.xlu1 %v1617_v29  ;;  %1621 = vmax.xlane.f32.xlu0 %v1620_v30 }
 0x398   : > { %1624 = vmax.xlane.f32.xlu1 %v1623_v34 }
 0x3a9   : > { %6214 = vrot.lane.b32.xlu1 %v6841_v5, %s6522_s20 }
 0x3aa   : > { %6209 = vrot.lane.b32.xlu0 %v6829_v63, %s6522_s20 }
 0x3ad   : > { %2014 = vrot.lane.b32.xlu1 %v6819_v59, %s6522_s20 }
 0x3b1   : > { %6219 = vrot.lane.b32.xlu1 %v6851_v11, %s6522_s20 }
 0x415   : > { %v1604_v37 = vpop.xlane.xlu0 %1603 }
 0x416   : > { %v1626_v38 = vsub.f32 %v1593_v51, %v1604_v37 }
 0x418   : > { %v1634_v41 = vmul.f32 1.442695, %v1626_v38 }
 0x419   : > { %v1607_v44 = vpop.xlane.xlu0 %1606  ;;  %v1610_v49 = vpop.xlane.xlu1 %1609 }
 0x41a   : > { %6328 = vpow2.f32 %v1634_v41  ;;  %v1627_v50 = vsub.f32 %v1594_v53, %v1607_v44  ;;  %v1628_v55 = vsub.f32 %v1595_v60, %v1610_v49 }
 0x41c   : > { %v1636_v56 = vmul.f32 1.442695, %v1627_v50  ;;  %v1638_v58 = vmul.f32 1.442695, %v1628_v55 }
 0x41d   : > { %v1616_v1 = vpop.xlane.xlu0 %1615  ;;  %v1613_v3 = vpop.xlane.xlu1 %1612 }
 0x41e   : > { %6330 = vpow2.f32 %v1636_v56  ;;  %v1630_v4 = vsub.f32 %v1597_v9, %v1616_v1  ;;  %v1629_v7 = vsub.f32 %v1596_v62, %v1613_v3 }
 0x41f   : > { %6332 = vpow2.f32 %v1638_v58 }
 0x420   : > { %v1642_v13 = vmul.f32 1.442695, %v1630_v4  ;;  %v1640_v17 = vmul.f32 1.442695, %v1629_v7 }
 0x421   : > { %v1619_v18 = vpop.xlane.xlu1 %1618  ;;  %v1622_v22 = vpop.xlane.xlu0 %1621 }
 0x422   : > { %6334 = vpow2.f32 %v1642_v13  ;;  %v1631_v51 = vsub.f32 %v1598_v10, %v1619_v18  ;;  %v1632_v29 = vsub.f32 %v1599_v25, %v1622_v22 }
 0x423   : > { %6336 = vpow2.f32 %v1640_v17 }
 0x424   : > { %v6329_v30 = vpop.eup %6328  ;;  %v1644_v34 = vmul.f32 1.442695, %v1631_v51  ;;  %v1646_v53 = vmul.f32 1.442695, %v1632_v29 }
 0x425   : > { %v1625_v60 = vpop.xlane.xlu1 %1624  ;;  %v1650_v37 = vsel %vm1601_vm10, %v6329_v30, 0.0  ;;  %v6210_v17 = vpop.permute.xlu0 %6209 }
 0x426   : > { %6338 = vpow2.f32 %v1644_v34  ;;  %v1633_v38 = vsub.f32 %v1600_v27, %v1625_v60  ;;  %1651 = vadd.xlane.f32.xlu0 %v1650_v37 }
 0x427   : > { %6340 = vpow2.f32 %v1646_v53 }
 0x428   : > { %v6331_v62 = vpop.eup %6330  ;;  %v1648_v9 = vmul.f32 1.442695, %v1633_v38 }
 0x429   : > { %v6333_v41 = vpop.eup %6332  ;;  %v1653_v44 = vsel %vm1601_vm10, %v6331_v62, 0.0  ;;  %v6215_v7 = vpop.permute.xlu1 %6214 }
 0x42a   : > { %6342 = vpow2.f32 %v1648_v9  ;;  %1654 = vadd.xlane.f32.xlu1 %v1653_v44  ;;  %v1656_v10 = vsel %vm1601_vm10, %v6333_v41, 0.0  ;;  %v6212_v44 = vunpack.i.h.bf16 %v6210_v17 }
 0x42b   : > { %1657 = vadd.xlane.f32.xlu0 %v1656_v10  ;;  %v6211_v10 = vunpack.i.l.bf16 %v6210_v17 }
 0x42c   : > { %v6912_v25 = vpop.eup %6334 }
 0x42d   : > { %v6337_v49 = vpop.eup %6336  ;;  %v1662_v50 = vsel %vm1601_vm10, %v6912_v25, 0.0  ;;  %v2015_v13 = vpop.permute.xlu1 %2014 }
 0x42e   : > { %v1659_v27 = vsel %vm1601_vm10, %v6337_v49, 0.0 }
 0x42f   : > { %1660 = vadd.xlane.f32.xlu1 %v1659_v27  ;;  %1663 = vadd.xlane.f32.xlu0 %v1662_v50 }
 0x430   : > { %v6917_v55 = vpop.eup %6338 }
 0x431   : > { %v6919_v56 = vpop.eup %6340  ;;  %v1665_v58 = vsel %vm1601_vm10, %v6917_v55, 0.0  ;;  %v6220_v18 = vpop.permute.xlu1 %6219 }
 0x432   : > { %v1668_v1 = vsel %vm1601_vm10, %v6919_v56, 0.0 }
 0x433   : > { %1666 = vadd.xlane.f32.xlu1 %v1665_v58  ;;  %1669 = vadd.xlane.f32.xlu0 %v1668_v1 }
 0x434   : > { %v6925_v3 = vpop.eup %6342 }
 0x435   : > { %v1671_v4 = vsel %vm1601_vm10, %v6925_v3, 0.0 }
 0x437   : > { %1672 = vadd.xlane.f32.xlu1 %v1671_v4 }
 0x448   : > { %2105 = vrot.lane.b32.xlu1 %v6835_v2, %s6522_s20 }
 0x449   : > { %2016 = vrot.lane.b32.xlu0 %v6817_v57, %s6522_s20 }
 0x44c   : > { %2107 = vrot.lane.b32.xlu1 %v6831_v0, %s6522_s20 }
 0x44d   : > { %6224 = vrot.lane.b32.xlu0 %v6865_v19, %s6522_s20 }
 0x450   : > { %2198 = vrot.lane.b32.xlu1 %v6843_v6, %s6522_s20 }
 0x451   : > { %2196 = vrot.lane.b32.xlu0 %v6847_v8, %s6522_s20 }
 0x454   : > { %2289 = vrot.lane.b32.xlu1 %v6853_v12, %s6522_s20 }
 0x455   : > { %2287 = vrot.lane.b32.xlu0 %v6859_v14, %s6522_s20 }
 0x4b3   : > { %v1652_v22 = vpop.xlane.xlu0 %1651 }
 0x4b4   : > { %6344 = vrcp.f32 %v1652_v22  ;;  %v6020_v22 = vpack.c.bf16 %v6212_v44, %v6211_v10 }
 0x4b7   : > { %v1655_v51 = vpop.xlane.xlu1 %1654 }
 0x4b8   : > { %6346 = vrcp.f32 %v1655_v51  ;;  %v1658_v29 = vpop.xlane.xlu0 %1657  ;;  %v6217_v51 = vunpack.i.h.bf16 %v6215_v7 }
 0x4b9   : > { %6348 = vrcp.f32 %v1658_v29  ;;  %v6216_v29 = vunpack.i.l.bf16 %v6215_v7 }
 0x4bc   : > { %v1661_v34 = vpop.xlane.xlu1 %1660  ;;  %v1664_v53 = vpop.xlane.xlu0 %1663 }
 0x4bd   : > { %6350 = vrcp.f32 %v1661_v34 }
 0x4be   : > { %v6345_v60 = vpop.eup %6344  ;;  %6352 = vrcp.f32 %v1664_v53 }
 0x4bf   : > { %v1682_v37 = vmul.f32 %v6345_v60, %v6329_v30  ;;  %v6222_v60 = vunpack.i.h.bf16 %v6220_v18 }
 0x4c0   : > { %v1667_v38 = vpop.xlane.xlu1 %1666  ;;  %v1670_v9 = vpop.xlane.xlu0 %1669 }
 0x4c1   : > { %6354 = vrcp.f32 %v1667_v38  ;;  %5706 = vmatprep.mubr.msk.f32.mxu0 %vm1601_vm10, %v1682_v37  ;;  %v6221_v37 = vunpack.i.l.bf16 %v6220_v18 }
 0x4c2   : > { %v6347_v50 = vpop.eup %6346  ;;  %6356 = vrcp.f32 %v1670_v9 }
 0x4c3   : > { %v6349_v27 = vpop.eup %6348  ;;  %v1683_v58 = vmul.f32 %v6347_v50, %v6331_v62 }
 0x4c4   : > { %v1673_v1 = vpop.xlane.xlu1 %1672  ;;  %v1684_v4 = vmul.f32 %v6349_v27, %v6333_v41  ;;  %v2017_v30 = vpop.permute.xlu0 %2016  ;;  %v6026_v41 = vpack.c.bf16 %v6217_v51, %v6216_v29 }
 0x4c5   : > { %6358 = vrcp.f32 %v1673_v1  ;;  %5707 = vmatmul.mubr.msk.f32.vlgmr.msra.gmra.mrb[24].mxu0 %vm1601_vm10, %v1683_v58 }
 0x4c6   : > { %5713 = vmatprep.mubr.msk.f32.mxu1 %vm1601_vm10, %v1684_v4  ;;  %6015 = vmatpush3.bf16.msra.mxu0 %v6885_v40 }
 0x4c7   : > { %v6351_v17 = vpop.eup %6350  ;;  %6022 = vmatprep.subr.msk.bf16.mxu0 %vm6823_vm9, %v6020_v22 }
 0x4c8   : > { %v6353_v34 = vpop.eup %6352  ;;  %v1685_v53 = vmul.f32 %v6351_v17, %v6337_v49  ;;  %v6225_v40 = vpop.permute.xlu0 %6224 }
 0x4c9   : > { %v1686_v62 = vmul.f32 %v6353_v34, %v6912_v25  ;;  %v6032_v25 = vpack.c.bf16 %v6222_v60, %v6221_v37  ;;  %v6227_v44 = vunpack.i.h.bf16 %v6225_v40  ;;  %v6226_v10 = vunpack.i.l.bf16 %v6225_v40 }
 0x4ca   : > { %5714 = vmatmul.mubr.msk.f32.vlgmr.msra.gmra.mrb[32].mxu1 %vm1601_vm10, %v1685_v53 }
 0x4cb   : > { %v6355_v38 = vpop.eup %6354  ;;  %5720 = vmatprep.mubr.msk.f32.mxu0 %vm1601_vm10, %v1686_v62  ;;  %6019 = vmatpush3.bf16.msra.mxu1 %v6890_v48  ;;  %v2106_v48 = vpop.permute.xlu1 %2105 }
 0x4cc   : > { %v6357_v7 = vpop.eup %6356  ;;  %6028 = vmatprep.subr.msk.bf16.mxu1 %vm6823_vm9, %v6026_v41  ;;  %v1687_v9 = vmul.f32 %v6355_v38, %v6917_v55  ;;  %v2197_v50 = vpop.permute.xlu0 %2196 }
 0x4cd   : > { %v1688_v49 = vmul.f32 %v6357_v7, %v6919_v56  ;;  %v6038_v56 = vpack.c.bf16 %v6227_v44, %v6226_v10 }
 0x4ce   : > { %5721 = vmatmul.mubr.msk.f32.vlgmr.msra.gmra.mrb[26].mxu0 %vm1601_vm10, %v1687_v9 }
 0x4cf   : > { %v6359_v18 = vpop.eup %6358  ;;  %5727 = vmatprep.mubr.msk.f32.mxu1 %vm1601_vm10, %v1688_v49  ;;  %6025 = vmatpush3.bf16.xpose.msk.msra.mxu0 %vm6823_vm9, %v6020_v22  ;;  %v2108_v27 = vpop.permute.xlu1 %2107 }
 0x4d0   : > { %5734 = vmatprep.mubr.msk.f32.mxu0 %vm1244_vm8, %v2015_v13  ;;  %6034 = vmatprep.subr.msk.bf16.mxu0 %vm6823_vm9, %v6032_v25  ;;  %v1689_v55 = vmul.f32 %v6359_v18, %v6925_v3  ;;  %v2288_v3 = vpop.permute.xlu0 %2287 }
 0x4d2   : > { %5728 = vmatmul.mubr.msk.f32.vlgmr.msra.gmra.mrb[34].mxu1 %vm1601_vm10, %v1689_v55 }
 0x4d3   : > { %5741 = vmatprep.mubr.msk.f32.mxu1 %vm1244_vm8, %v2106_v48  ;;  %v2199_v13 = vpop.permute.xlu1 %2198 }
 0x4d4   : > { %6031 = vmatpush3.bf16.xpose.msk.msra.mxu1 %vm6823_vm9, %v6026_v41 }
 0x4d5   : > { %6040 = vmatprep.subr.msk.bf16.mxu1 %vm6823_vm9, %v6038_v56 }
 0x4d6   : > { %5735 = vmatmul.mubr.msk.f32.vlgmr.msra.gmra.mrb[28].mxu0 %vm1244_vm8, %v2017_v30 }
 0x4d7   : > { %6037 = vmatpush3.bf16.xpose.msk.msra.mxu0 %vm6823_vm9, %v6032_v25  ;;  %5748 = vmatprep.mubr.msk.f32.mxu0 %vm1244_vm8, %v2197_v50  ;;  %v2290_v58 = vpop.permute.xlu1 %2289 }
 0x4db   : > { %5742 = vmatmul.mubr.msk.f32.vlgmr.msra.gmra.mrb[36].mxu1 %vm1244_vm8, %v2108_v27 }
 0x4dc   : > { %6043 = vmatpush3.bf16.xpose.msk.msra.mxu1 %vm6823_vm9, %v6038_v56  ;;  %5755 = vmatprep.mubr.msk.f32.mxu1 %vm1244_vm8, %v2288_v3 }
 0x4de   : > { %5749 = vmatmul.mubr.msk.f32.vlgmr.msra.gmra.mrb[30].mxu0 %vm1244_vm8, %v2199_v13 }
 0x4e3   : > { %5756 = vmatmul.mubr.msk.f32.vlgmr.msra.gmra.mrb[38].mxu1 %vm1244_vm8, %v2290_v58 }
 0x598   : > { %v6983_v1 = vpop.f32.mrb[24].mxu0 }
 0x599   : > { %v6985_v4 = vpop.f32.mrb[25].mxu0 }
 0x59d   : > { %v6987_v22 = vpop.f32.mrb[32].mxu1 }
 0x59e   : > { %v6989_v51 = vpop.f32.mrb[33].mxu1 }
 0x5a1   : > { %v6991_v29 = vpop.f32.mrb[26].mxu0 }
 0x5a2   : > { %v6993_v30 = vpop.f32.mrb[27].mxu0 }
 0x5a5   : > { %v6995_v17 = vpop.f32.mrb[34].mxu1 }
 0x5a6   : > { %v6997_v34 = vpop.f32.mrb[35].mxu1 }
 0x5a9   : > { %v5736_v53 = vpop.f32.mrb[28].mxu0 }
 0x5aa   : > { %v2379_v62 = vmul.f32 0.35355338, %v5736_v53  ;;  %v2096_v41 = vpop.f32.mrb[29].mxu0 }
 0x5ab   : > { %v2378_v60 = vmul.f32 0.35355338, %v2096_v41 }
 0x5ac   : > { %v2389_v37 = vsel %vm1601_vm10, %v2379_v62, -inf }
 0x5ad   : > { %2390 = vmax.xlane.f32.xlu1 %v2389_v37  ;;  %v2386_v38 = vsel %vm1601_vm10, %v2378_v60, -inf }
 0x5ae   : > { %v5743_v7 = vpop.f32.mrb[36].mxu1  ;;  %2387 = vmax.xlane.f32.xlu0 %v2386_v38 }
 0x5af   : > { %v2187_v40 = vpop.f32.mrb[37].mxu1  ;;  %v2381_v25 = vmul.f32 0.35355338, %v5743_v7 }
 0x5b0   : > { %v2380_v9 = vmul.f32 0.35355338, %v2187_v40 }
 0x5b1   : > { %v5750_v49 = vpop.f32.mrb[30].mxu0  ;;  %v2395_v50 = vsel %vm1601_vm10, %v2381_v25, -inf }
 0x5b2   : > { %v2383_v18 = vmul.f32 0.35355338, %v5750_v49  ;;  %v2392_v44 = vsel %vm1601_vm10, %v2380_v9, -inf  ;;  %v2278_v10 = vpop.f32.mrb[31].mxu0 }
 0x5b3   : > { %2393 = vmax.xlane.f32.xlu0 %v2392_v44  ;;  %v2382_v55 = vmul.f32 0.35355338, %v2278_v10 }
 0x5b4   : > { %v2401_v48 = vsel %vm1601_vm10, %v2383_v18, -inf }
 0x5b5   : > { %2402 = vmax.xlane.f32.xlu1 %v2401_v48  ;;  %v2398_v53 = vsel %vm1601_vm10, %v2382_v55, -inf }
 0x5b6   : > { %v5757_v56 = vpop.f32.mrb[38].mxu1 }
 0x5b7   : > { %v2385_v27 = vmul.f32 0.35355338, %v5757_v56  ;;  %v2369_v3 = vpop.f32.mrb[39].mxu1  ;;  %2396 = vmax.xlane.f32.xlu0 %v2395_v50 }
 0x5b8   : > { %v2384_v58 = vmul.f32 0.35355338, %v2369_v3 }
 0x5b9   : > { %v2407_v13 = vsel %vm1601_vm10, %v2385_v27, -inf }
 0x5ba   : > { %2408 = vmax.xlane.f32.xlu1 %v2407_v13  ;;  %v2404_v41 = vsel %vm1601_vm10, %v2384_v58, -inf }
 0x5bb   : > { %2399 = vmax.xlane.f32.xlu0 %v2398_v53 }
 0x5bf   : > { %2405 = vmax.xlane.f32.xlu0 %v2404_v41 }
 0x5cb   : > { %6234 = vrot.lane.b32.xlu1 %v6879_v33, %s6522_s20 }
 0x5cf   : > { %6239 = vrot.lane.b32.xlu1 %v6883_v39, %s6522_s20 }
 0x5d3   : > { %6244 = vrot.lane.b32.xlu1 %v6888_v47, %s6522_s20 }
 0x5d5   : > { %6229 = vrot.lane.b32.xlu0 %v6875_v26, %s6522_s20  ;;  %s5338_s20 = sshll.u32 %s6615_s25, 6  ;;  %s6528_s25 = smov [#allocation2]  }
 0x5d6   : > { %s7525_s19 = scalar_lea.hbm %s7579_s12, %s5338_s20 }
 0x5d7   : > { %6254 = vrot.lane.b32.xlu1 %v6841_v5, %s6523_s26 }
 0x5d9   : > { %6249 = vrot.lane.b32.xlu0 %v6829_v63, %s6523_s26 }
 0x5db   : > { %6259 = vrot.lane.b32.xlu1 %v6851_v11, %s6523_s26 }
 0x5dd   : > { %2830 = vrot.lane.b32.xlu0 %v6819_v59, %s6523_s26 }
 0x63a   : > { %v2391_v37 = vpop.xlane.xlu1 %2390 }
 0x63b   : > { %v2411_v38 = vsub.f32 %v2379_v62, %v2391_v37  ;;  %v2388_v7 = vpop.xlane.xlu0 %2387 }
 0x63c   : > { %v2410_v40 = vsub.f32 %v2378_v60, %v2388_v7 }
 0x63d   : > { %v2420_v49 = vmul.f32 1.442695, %v2411_v38 }
 0x63e   : > { %v2418_v44 = vmul.f32 1.442695, %v2410_v40 }
 0x63f   : > { %6360 = vpow2.f32 %v2420_v49 }
 0x640   : > { %6362 = vpow2.f32 %v2418_v44  ;;  %v2394_v10 = vpop.xlane.xlu0 %2393 }
 0x641   : > { %v2412_v48 = vsub.f32 %v2380_v9, %v2394_v10 }
 0x642   : > { %v2403_v56 = vpop.xlane.xlu1 %2402 }
 0x643   : > { %v2422_v50 = vmul.f32 1.442695, %v2412_v48  ;;  %v2415_v3 = vsub.f32 %v2383_v18, %v2403_v56 }
 0x644   : > { %v2397_v13 = vpop.xlane.xlu0 %2396 }
 0x645   : > { %6364 = vpow2.f32 %v2422_v50  ;;  %v2413_v53 = vsub.f32 %v2381_v25, %v2397_v13  ;;  %v2428_v41 = vmul.f32 1.442695, %v2415_v3 }
 0x647   : > { %v2424_v52 = vmul.f32 1.442695, %v2413_v53  ;;  %v2409_v54 = vpop.xlane.xlu1 %2408 }
 0x648   : > { %v2417_v42 = vsub.f32 %v2385_v27, %v2409_v54  ;;  %v2400_v45 = vpop.xlane.xlu0 %2399 }
 0x649   : > { %v7023_v62 = vpop.eup %6360  ;;  %6366 = vpow2.f32 %v2424_v52  ;;  %v2414_v60 = vsub.f32 %v2382_v55, %v2400_v45 }
 0x64a   : > { %v7025_v37 = vpop.eup %6362  ;;  %v2437_v9 = vsel %vm1601_vm10, %v7023_v62, 0.0  ;;  %6368 = vpow2.f32 %v2428_v41  ;;  %v2432_v38 = vmul.f32 1.442695, %v2417_v42 }
 0x64b   : > { %v2426_v18 = vmul.f32 1.442695, %v2414_v60  ;;  %v6235_v7 = vpop.permute.xlu1 %6234  ;;  %2438 = vadd.xlane.f32.xlu1 %v2437_v9  ;;  %v2434_v25 = vsel %vm1601_vm10, %v7025_v37, 0.0 }
 0x64c   : > { %v6237_v40 = vunpack.i.h.bf16 %v6235_v7  ;;  %v6236_v54 = vunpack.i.l.bf16 %v6235_v7  ;;  %v2406_v27 = vpop.xlane.xlu0 %2405  ;;  %2435 = vadd.xlane.f32.xlu0 %v2434_v25 }
 0x64d   : > { %6370 = vpow2.f32 %v2426_v18  ;;  %v2416_v52 = vsub.f32 %v2384_v58, %v2406_v27 }
 0x64e   : > { %v6048_v45 = vpack.c.bf16 %v6237_v40, %v6236_v54  ;;  %6372 = vpow2.f32 %v2432_v38 }
 0x64f   : > { %v7031_v55 = vpop.eup %6364  ;;  %v2430_v49 = vmul.f32 1.442695, %v2416_v52  ;;  %v6240_v44 = vpop.permute.xlu1 %6239 }
 0x650   : > { %v6242_v10 = vunpack.i.h.bf16 %v6240_v44  ;;  %6049 = vmatprep.subr.bf16.mxu1 %v6048_v45  ;;  %v6230_v42 = vpop.permute.xlu0 %6229  ;;  %v2440_v48 = vsel %vm1601_vm10, %v7031_v55, 0.0  ;;  %v6241_v56 = vunpack.i.l.bf16 %v6240_v44 }
 0x651   : > { %6374 = vpow2.f32 %v2430_v49  ;;  %v6232_v50 = vunpack.i.h.bf16 %v6230_v42  ;;  %v6231_v3 = vunpack.i.l.bf16 %v6230_v42  ;;  %6051 = vmatpush3.bf16.msra.mxu1 %v6048_v45  ;;  %2441 = vadd.xlane.f32.xlu0 %v2440_v48 }
 0x652   : > { %v6052_v18 = vpack.c.bf16 %v6242_v10, %v6241_v56 }
 0x653   : > { %v7035_v13 = vpop.eup %6366  ;;  %v6044_v58 = vpack.c.bf16 %v6232_v50, %v6231_v3  ;;  %v6245_v53 = vpop.permute.xlu1 %6244 }
 0x654   : > { %v6247_v41 = vunpack.i.h.bf16 %v6245_v53  ;;  %v6246_v60 = vunpack.i.l.bf16 %v6245_v53  ;;  %v2443_v9 = vsel %vm1601_vm10, %v7035_v13, 0.0  ;;  %v7039_v38 = vpop.eup %6368  ;;  %v6250_v10 = vpop.permute.xlu0 %6249 }
 0x655   : > { %2444 = vadd.xlane.f32.xlu1 %v2443_v9  ;;  %6045 = vmatprep.subr.bf16.mxu0 %v6044_v58  ;;  %v2449_v40 = vsel %vm1601_vm10, %v7039_v38, 0.0  ;;  %v6251_v9 = vunpack.i.l.bf16 %v6250_v10 }
 0x656   : > { %v7041_v7 = vpack.c.bf16 %v6247_v41, %v6246_v60  ;;  %6047 = vmatpush3.bf16.msra.mxu0 %v6044_v58  ;;  %v6252_v60 = vunpack.i.h.bf16 %v6250_v10 }
 0x657   : > { %v7043_v25 = vpop.eup %6370  ;;  %6053 = vmatprep.subr.bf16.mxu0 %v6052_v18  ;;  %v6255_v44 = vpop.permute.xlu1 %6254 }
 0x658   : > { %6057 = vmatprep.subr.bf16.mxu1 %v7041_v7  ;;  %v2446_v54 = vsel %vm1601_vm10, %v7043_v25, 0.0  ;;  %v7050_v27 = vpop.eup %6372  ;;  %v2831_v48 = vpop.permute.xlu0 %2830  ;;  %v6256_v10 = vunpack.i.l.bf16 %v6255_v44 }
 0x659   : > { %2450 = vadd.xlane.f32.xlu1 %v2449_v40  ;;  %2447 = vadd.xlane.f32.xlu0 %v2446_v54  ;;  %v2455_v45 = vsel %vm1601_vm10, %v7050_v27, 0.0 }
 0x65b   : > { %v7052_v52 = vpop.eup %6374  ;;  %v6260_v42 = vpop.permute.xlu1 %6259 }
 0x65c   : > { %v2452_v49 = vsel %vm1601_vm10, %v7052_v52, 0.0 }
 0x65d   : > { %2456 = vadd.xlane.f32.xlu1 %v2455_v45  ;;  %2453 = vadd.xlane.f32.xlu0 %v2452_v49 }
 0x66e   : > { %2921 = vrot.lane.b32.xlu1 %v6835_v2, %s6523_s26 }
 0x672   : > { %2923 = vrot.lane.b32.xlu1 %v6831_v0, %s6523_s26 }
 0x673   : > { %2832 = vrot.lane.b32.xlu0 %v6817_v57, %s6523_s26 }
 0x676   : > { %3014 = vrot.lane.b32.xlu1 %v6843_v6, %s6523_s26 }
 0x677   : > { %6264 = vrot.lane.b32.xlu0 %v6865_v19, %s6523_s26 }
 0x67a   : > { %3105 = vrot.lane.b32.xlu1 %v6853_v12, %s6523_s26 }
 0x67b   : > { %3012 = vrot.lane.b32.xlu0 %v6847_v8, %s6523_s26 }
 0x67f   : > { %3103 = vrot.lane.b32.xlu0 %v6859_v14, %s6523_s26 }
 0x6d8   : > { %v2439_v56 = vpop.xlane.xlu1 %2438 }
 0x6d9   : > { %6376 = vrcp.f32 %v2439_v56  ;;  %v2436_v50 = vpop.xlane.xlu0 %2435  ;;  %v6060_v56 = vpack.c.bf16 %v6252_v60, %v6251_v9 }
 0x6da   : > { %6378 = vrcp.f32 %v2436_v50 }
 0x6de   : > { %v2442_v3 = vpop.xlane.xlu0 %2441 }
 0x6df   : > { %6380 = vrcp.f32 %v2442_v3 }
 0x6e2   : > { %v2445_v58 = vpop.xlane.xlu1 %2444 }
 0x6e3   : > { %v6377_v53 = vpop.eup %6376  ;;  %6382 = vrcp.f32 %v2445_v58 }
 0x6e4   : > { %v6379_v41 = vpop.eup %6378  ;;  %v2467_v54 = vmul.f32 %v6377_v53, %v7023_v62  ;;  %v6257_v62 = vunpack.i.h.bf16 %v6255_v44 }
 0x6e5   : > { %v2466_v40 = vmul.f32 %v6379_v41, %v7025_v37 }
 0x6e6   : > { %v2451_v45 = vpop.xlane.xlu1 %2450  ;;  %v2448_v49 = vpop.xlane.xlu0 %2447  ;;  %v6066_v9 = vpack.c.bf16 %v6257_v62, %v6256_v10 }
 0x6e7   : > { %6384 = vrcp.f32 %v2451_v45  ;;  %5762 = vmatprep.mubr.msk.f32.mxu0 %vm1601_vm10, %v2466_v40  ;;  %v6261_v45 = vunpack.i.l.bf16 %v6260_v42 }
 0x6e8   : > { %6386 = vrcp.f32 %v2448_v49  ;;  %5763 = vmatmul.mubr.msk.f32.vlgmr.msra.gmra.mrb[32].mxu0 %vm1601_vm10, %v2467_v54  ;;  %v6262_v54 = vunpack.i.h.bf16 %v6260_v42 }
 0x6e9   : > { %v6381_v50 = vpop.eup %6380  ;;  %6055 = vmatpush3.bf16.msra.mxu0 %v6052_v18 }
 0x6ea   : > { %v2457_v3 = vpop.xlane.xlu1 %2456  ;;  %v2454_v58 = vpop.xlane.xlu0 %2453  ;;  %6062 = vmatprep.subr.msk.bf16.mxu0 %vm6823_vm9, %v6060_v56  ;;  %v2468_v37 = vmul.f32 %v6381_v50, %v7031_v55 }
 0x6eb   : > { %6388 = vrcp.f32 %v2457_v3  ;;  %v6072_v3 = vpack.c.bf16 %v6262_v54, %v6261_v45 }
 0x6ec   : > { %6390 = vrcp.f32 %v2454_v58  ;;  %5769 = vmatprep.mubr.msk.f32.mxu1 %vm1601_vm10, %v2468_v37 }
 0x6ed   : > { %v6383_v53 = vpop.eup %6382 }
 0x6ee   : > { %v2469_v41 = vmul.f32 %v6383_v53, %v7035_v13  ;;  %v2833_v60 = vpop.permute.xlu0 %2832  ;;  %v2922_v42 = vpop.permute.xlu1 %2921 }
 0x6f0   : > { %5770 = vmatmul.mubr.msk.f32.vlgmr.msra.gmra.mrb[40].mxu1 %vm1601_vm10, %v2469_v41 }
 0x6f1   : > { %v6385_v18 = vpop.eup %6384  ;;  %6059 = vmatpush3.bf16.msra.mxu1 %v7041_v7 }
 0x6f2   : > { %v6387_v40 = vpop.eup %6386  ;;  %v2471_v55 = vmul.f32 %v6385_v18, %v7039_v38  ;;  %6068 = vmatprep.subr.msk.bf16.mxu1 %vm6823_vm9, %v6066_v9  ;;  %v6265_v44 = vpop.permute.xlu0 %6264 }
 0x6f3   : > { %v2470_v49 = vmul.f32 %v6387_v40, %v7043_v25  ;;  %v6267_v37 = vunpack.i.h.bf16 %v6265_v44  ;;  %v6266_v7 = vunpack.i.l.bf16 %v6265_v44 }
 0x6f5   : > { %v6389_v50 = vpop.eup %6388  ;;  %5776 = vmatprep.mubr.msk.f32.mxu0 %vm1601_vm10, %v2470_v49  ;;  %v6078_v25 = vpack.c.bf16 %v6267_v37, %v6266_v7 }
 0x6f6   : > { %v6391_v13 = vpop.eup %6390  ;;  %v2473_v58 = vmul.f32 %v6389_v50, %v7050_v27  ;;  %5777 = vmatmul.mubr.msk.f32.vlgmr.msra.gmra.mrb[34].mxu0 %vm1601_vm10, %v2471_v55  ;;  %v3013_v27 = vpop.permute.xlu0 %3012 }
 0x6f7   : > { %6065 = vmatpush3.bf16.xpose.msk.msra.mxu0 %vm6823_vm9, %v6060_v56  ;;  %5790 = vmatprep.mubr.msk.f32.mxu0 %vm1244_vm8, %v2831_v48  ;;  %v2472_v38 = vmul.f32 %v6391_v13, %v7052_v52  ;;  %v2924_v48 = vpop.permute.xlu1 %2923 }
 0x6f8   : > { %6074 = vmatprep.subr.msk.bf16.mxu0 %vm6823_vm9, %v6072_v3 }
 0x6f9   : > { %5783 = vmatprep.mubr.msk.f32.mxu1 %vm1601_vm10, %v2472_v38 }
 0x6fa   : > { %5784 = vmatmul.mubr.msk.f32.vlgmr.msra.gmra.mrb[42].mxu1 %vm1601_vm10, %v2473_v58  ;;  %v3104_v52 = vpop.permute.xlu0 %3103 }
 0x6fb   : > { %6071 = vmatpush3.bf16.xpose.msk.msra.mxu1 %vm6823_vm9, %v6066_v9  ;;  %5797 = vmatprep.mubr.msk.f32.mxu1 %vm1244_vm8, %v2922_v42  ;;  %v3015_v56 = vpop.permute.xlu1 %3014 }
 0x6fc   : > { %6080 = vmatprep.subr.msk.bf16.mxu1 %vm6823_vm9, %v6078_v25 }
 0x6fe   : > { %5791 = vmatmul.mubr.msk.f32.vlgmr.msra.gmra.mrb[36].mxu0 %vm1244_vm8, %v2833_v60 }
 0x6ff   : > { %6077 = vmatpush3.bf16.xpose.msk.msra.mxu0 %vm6823_vm9, %v6072_v3  ;;  %5804 = vmatprep.mubr.msk.f32.mxu0 %vm1244_vm8, %v3013_v27  ;;  %v3106_v62 = vpop.permute.xlu1 %3105 }
 0x702   : > { %5798 = vmatmul.mubr.msk.f32.vlgmr.msra.gmra.mrb[44].mxu1 %vm1244_vm8, %v2924_v48 }
 0x703   : > { %6083 = vmatpush3.bf16.xpose.msk.msra.mxu1 %vm6823_vm9, %v6078_v25  ;;  %5811 = vmatprep.mubr.msk.f32.mxu1 %vm1244_vm8, %v3104_v52 }
 0x706   : > { %5805 = vmatmul.mubr.msk.f32.vlgmr.msra.gmra.mrb[38].mxu0 %vm1244_vm8, %v3015_v56 }
 0x70a   : > { %5812 = vmatmul.mubr.msk.f32.vlgmr.msra.gmra.mrb[46].mxu1 %vm1244_vm8, %v3106_v62 }
 0x7bb   : > { %v7115_v10 = vpop.f32.mrb[32].mxu0 }
 0x7bc   : > { %v7117_v53 = vpop.f32.mrb[33].mxu0 }
 0x7c3   : > { %v7119_v41 = vpop.f32.mrb[40].mxu1 }
 0x7c4   : > { %v7121_v60 = vpop.f32.mrb[41].mxu1 }
 0x7c9   : > { %v7123_v9 = vpop.f32.mrb[34].mxu0 }
 0x7ca   : > { %v7125_v18 = vpop.f32.mrb[35].mxu0 }
 0x7cd   : > { %v7127_v40 = vpop.f32.mrb[42].mxu1 }
 0x7ce   : > { %v7129_v54 = vpop.f32.mrb[43].mxu1 }
 0x7d1   : > { %v5792_v45 = vpop.f32.mrb[36].mxu0 }
 0x7d2   : > { %v3195_v55 = vmul.f32 0.35355338, %v5792_v45  ;;  %v2912_v44 = vpop.f32.mrb[37].mxu0 }
 0x7d3   : > { %v3194_v49 = vmul.f32 0.35355338, %v2912_v44 }
 0x7d4   : > { %v3205_v50 = vsel %vm1601_vm10, %v3195_v55, -inf }
 0x7d5   : > { %v5799_v13 = vpop.f32.mrb[44].mxu1  ;;  %3206 = vmax.xlane.f32.xlu1 %v3205_v50  ;;  %v3202_v3 = vsel %vm1601_vm10, %v3194_v49, -inf }
 0x7d6   : > { %v3003_v58 = vpop.f32.mrb[45].mxu1  ;;  %3203 = vmax.xlane.f32.xlu0 %v3202_v3  ;;  %v3197_v7 = vmul.f32 0.35355338, %v5799_v13 }
 0x7d7   : > { %v3196_v37 = vmul.f32 0.35355338, %v3003_v58 }
 0x7d8   : > { %v3211_v62 = vsel %vm1601_vm10, %v3197_v7, -inf }
 0x7d9   : > { %v5806_v42 = vpop.f32.mrb[38].mxu0  ;;  %v3208_v38 = vsel %vm1601_vm10, %v3196_v37, -inf }
 0x7da   : > { %v3199_v25 = vmul.f32 0.35355338, %v5806_v42  ;;  %3209 = vmax.xlane.f32.xlu0 %v3208_v38  ;;  %v3094_v27 = vpop.f32.mrb[39].mxu0 }
 0x7db   : > { %v3198_v52 = vmul.f32 0.35355338, %v3094_v27 }
 0x7dc   : > { %v3217_v48 = vsel %vm1601_vm10, %v3199_v25, -inf }
 0x7dd   : > { %v5813_v56 = vpop.f32.mrb[46].mxu1  ;;  %3218 = vmax.xlane.f32.xlu1 %v3217_v48  ;;  %v3214_v13 = vsel %vm1601_vm10, %v3198_v52, -inf }
 0x7de   : > { %v3201_v45 = vmul.f32 0.35355338, %v5813_v56  ;;  %v3185_v44 = vpop.f32.mrb[47].mxu1  ;;  %3212 = vmax.xlane.f32.xlu0 %v3211_v62 }
 0x7df   : > { %v3200_v3 = vmul.f32 0.35355338, %v3185_v44 }
 0x7e0   : > { %v3223_v50 = vsel %vm1601_vm10, %v3201_v45, -inf }
 0x7e1   : > { %3224 = vmax.xlane.f32.xlu1 %v3223_v50  ;;  %v3220_v58 = vsel %vm1601_vm10, %v3200_v3, -inf }
 0x7e2   : > { %3215 = vmax.xlane.f32.xlu0 %v3214_v13 }
 0x7e6   : > { %3221 = vmax.xlane.f32.xlu0 %v3220_v58 }
 0x7f2   : > { %6274 = vrot.lane.b32.xlu1 %v6879_v33, %s6523_s26 }
 0x7f6   : > { %6279 = vrot.lane.b32.xlu1 %v6883_v39, %s6523_s26 }
 0x7fa   : > { %6284 = vrot.lane.b32.xlu1 %v6888_v47, %s6523_s26 }
 0x7fc   : > { %6269 = vrot.lane.b32.xlu0 %v6875_v26, %s6523_s26  ;;  %s423_s26 = scalar_lea.vmem [#allocation2], %s5162_s18  ;;  %s6461_s18 = sshll.u32 %s6528_s25, 4  ;;  %s6462_s18 = int_to_ptr.vmem [resolvable:$false] %s6461_s18 }
 0x7fd   : > { %s6463_s0 = scalar_lea.vmem %s6462_s18, 128 }
 0x7fe   : > { %6294 = vrot.lane.b32.xlu1 %v6841_v5, %s6524_s28 }
 0x800   : > { %6289 = vrot.lane.b32.xlu0 %v6829_v63, %s6524_s28 }
 0x802   : > { %3638 = vrot.lane.b32.xlu1 %v6819_v59, %s6524_s28 }
 0x804   : > { %6299 = vrot.lane.b32.xlu0 %v6851_v11, %s6524_s28 }
 0x862   : > { %v3207_v42 = vpop.xlane.xlu1 %3206 }
 0x863   : > { %v3227_v38 = vsub.f32 %v3195_v55, %v3207_v42  ;;  %v3204_v27 = vpop.xlane.xlu0 %3203 }
 0x864   : > { %v3226_v48 = vsub.f32 %v3194_v49, %v3204_v27 }
 0x865   : > { %v3236_v56 = vmul.f32 1.442695, %v3227_v38 }
 0x866   : > { %v3234_v62 = vmul.f32 1.442695, %v3226_v48 }
 0x867   : > { %6392 = vpow2.f32 %v3236_v56  ;;  %v3210_v44 = vpop.xlane.xlu0 %3209 }
 0x868   : > { %6394 = vpow2.f32 %v3234_v62  ;;  %v3228_v50 = vsub.f32 %v3196_v37, %v3210_v44 }
 0x86a   : > { %v3238_v5 = vmul.f32 1.442695, %v3228_v50  ;;  %v3219_v13 = vpop.xlane.xlu1 %3218 }
 0x86b   : > { %v3231_v58 = vsub.f32 %v3199_v25, %v3219_v13  ;;  %v3213_v63 = vpop.xlane.xlu0 %3212 }
 0x86c   : > { %6396 = vpow2.f32 %v3238_v5  ;;  %v3229_v31 = vsub.f32 %v3197_v7, %v3213_v63 }
 0x86d   : > { %v3244_v59 = vmul.f32 1.442695, %v3231_v58 }
 0x86e   : > { %v3240_v35 = vmul.f32 1.442695, %v3229_v31  ;;  %v3225_v20 = vpop.xlane.xlu1 %3224 }
 0x86f   : > { %v3233_v11 = vsub.f32 %v3201_v45, %v3225_v20  ;;  %v3216_v23 = vpop.xlane.xlu0 %3215 }
 0x870   : > { %6398 = vpow2.f32 %v3240_v35  ;;  %v3230_v55 = vsub.f32 %v3198_v52, %v3216_v23 }
 0x871   : > { %v7155_v49 = vpop.eup %6392  ;;  %6400 = vpow2.f32 %v3244_v59  ;;  %v3248_v38 = vmul.f32 1.442695, %v3233_v11 }
 0x872   : > { %v7157_v42 = vpop.eup %6394  ;;  %v3242_v37 = vmul.f32 1.442695, %v3230_v55  ;;  %v6275_v27 = vpop.permute.xlu1 %6274  ;;  %v3253_v25 = vsel %vm1601_vm10, %v7155_v49, 0.0 }
 0x873   : > { %v6277_v48 = vunpack.i.h.bf16 %v6275_v27  ;;  %v6276_v7 = vunpack.i.l.bf16 %v6275_v27  ;;  %3254 = vadd.xlane.f32.xlu1 %v3253_v25  ;;  %v3222_v31 = vpop.xlane.xlu0 %3221  ;;  %v3250_v20 = vsel %vm1601_vm10, %v7157_v42, 0.0 }
 0x874   : > { %6402 = vpow2.f32 %v3242_v37  ;;  %v3232_v23 = vsub.f32 %v3200_v3, %v3222_v31  ;;  %3251 = vadd.xlane.f32.xlu0 %v3250_v20 }
 0x875   : > { %v6088_v35 = vpack.c.bf16 %v6277_v48, %v6276_v7  ;;  %6404 = vpow2.f32 %v3248_v38 }
 0x876   : > { %v7163_v52 = vpop.eup %6396  ;;  %v3246_v45 = vmul.f32 1.442695, %v3232_v23  ;;  %v6280_v56 = vpop.permute.xlu1 %6279 }
 0x877   : > { %v6282_v62 = vunpack.i.h.bf16 %v6280_v56  ;;  %6089 = vmatprep.subr.bf16.mxu1 %v6088_v35  ;;  %v6270_v44 = vpop.permute.xlu0 %6269  ;;  %v3256_v50 = vsel %vm1601_vm10, %v7163_v52, 0.0  ;;  %v6281_v5 = vunpack.i.l.bf16 %v6280_v56 }
 0x878   : > { %6406 = vpow2.f32 %v3246_v45  ;;  %v6272_v13 = vunpack.i.h.bf16 %v6270_v44  ;;  %v6271_v58 = vunpack.i.l.bf16 %v6270_v44  ;;  %6091 = vmatpush3.bf16.msra.mxu1 %v6088_v35  ;;  %3257 = vadd.xlane.f32.xlu0 %v3256_v50 }
 0x879   : > { %v6092_v27 = vpack.c.bf16 %v6282_v62, %v6281_v5 }
 0x87a   : > { %v7167_v3 = vpop.eup %6398  ;;  %v6084_v63 = vpack.c.bf16 %v6272_v13, %v6271_v58  ;;  %v6285_v59 = vpop.permute.xlu1 %6284 }
 0x87b   : > { %v6287_v11 = vunpack.i.h.bf16 %v6285_v59  ;;  %v6286_v55 = vunpack.i.l.bf16 %v6285_v59  ;;  %v3259_v38 = vsel %vm1601_vm10, %v7167_v3, 0.0  ;;  %v7171_v37 = vpop.eup %6400 }
 0x87c   : > { %3260 = vadd.xlane.f32.xlu1 %v3259_v38  ;;  %6085 = vmatprep.subr.bf16.mxu0 %v6084_v63  ;;  %v3265_v7 = vsel %vm1601_vm10, %v7171_v37, 0.0 }
 0x87d   : > { %v7173_v25 = vpack.c.bf16 %v6287_v11, %v6286_v55  ;;  %6087 = vmatpush3.bf16.msra.mxu0 %v6084_v63 }
 0x87e   : > { %v7175_v48 = vpop.eup %6402  ;;  %6093 = vmatprep.subr.bf16.mxu0 %v6092_v27 }
 0x87f   : > { %6097 = vmatprep.subr.bf16.mxu1 %v7173_v25  ;;  %v3262_v31 = vsel %vm1601_vm10, %v7175_v48, 0.0  ;;  %v7182_v20 = vpop.eup %6404 }
 0x880   : > { %3266 = vadd.xlane.f32.xlu1 %v3265_v7  ;;  %3263 = vadd.xlane.f32.xlu0 %v3262_v31  ;;  %v3271_v35 = vsel %vm1601_vm10, %v7182_v20, 0.0 }
 0x882   : > { %v7184_v23 = vpop.eup %6406 }
 0x883   : > { %v3268_v45 = vsel %vm1601_vm10, %v7184_v23, 0.0 }
 0x884   : > { %3272 = vadd.xlane.f32.xlu1 %v3271_v35  ;;  %3269 = vadd.xlane.f32.xlu0 %v3268_v45 }
 0x895   : > { %6304 = vrot.lane.b32.xlu1 %v6865_v19, %s6524_s28  ;;  %v6295_v19 = vpop.permute.xlu1 %6294 }
 0x896   : > { %v6296_v31 = vunpack.i.l.bf16 %v6295_v19 }
 0x899   : > { %3731 = vrot.lane.b32.xlu1 %v6831_v0, %s6524_s28  ;;  %v6290_v0 = vpop.permute.xlu0 %6289  ;;  %v3639_v56 = vpop.permute.xlu1 %3638 }
 0x89a   : > { %3640 = vrot.lane.b32.xlu0 %v6817_v57, %s6524_s28  ;;  %v6292_v5 = vunpack.i.h.bf16 %v6290_v0  ;;  %v6291_v13 = vunpack.i.l.bf16 %v6290_v0 }
 0x89c   : > { %v6100_v11 = vpack.c.bf16 %v6292_v5, %v6291_v13 }
 0x89d   : > { %3822 = vrot.lane.b32.xlu1 %v6843_v6, %s6524_s28  ;;  %v6300_v62 = vpop.permute.xlu0 %6299 }
 0x89e   : > { %3729 = vrot.lane.b32.xlu0 %v6835_v2, %s6524_s28 }
 0x8a1   : > { %3913 = vrot.lane.b32.xlu1 %v6853_v12, %s6524_s28 }
 0x8a2   : > { %3820 = vrot.lane.b32.xlu0 %v6847_v8, %s6524_s28 }
 0x8a6   : > { %3911 = vrot.lane.b32.xlu0 %v6859_v14, %s6524_s28 }
 0x900   : > { %v3255_v57 = vpop.xlane.xlu1 %3254 }
 0x901   : > { %6408 = vrcp.f32 %v3255_v57  ;;  %v3252_v44 = vpop.xlane.xlu0 %3251  ;;  %v6302_v57 = vunpack.i.h.bf16 %v6300_v62 }
 0x902   : > { %6410 = vrcp.f32 %v3252_v44  ;;  %v6301_v44 = vunpack.i.l.bf16 %v6300_v62 }
 0x905   : > { %v3258_v6 = vpop.xlane.xlu0 %3257 }
 0x906   : > { %6412 = vrcp.f32 %v3258_v6 }
 0x909   : > { %v3261_v2 = vpop.xlane.xlu1 %3260 }
 0x90a   : > { %6414 = vrcp.f32 %v3261_v2 }
 0x90b   : > { %v6409_v50 = vpop.eup %6408 }
 0x90c   : > { %v6411_v12 = vpop.eup %6410  ;;  %v3283_v63 = vmul.f32 %v6409_v50, %v7155_v49 }
 0x90d   : > { %v3267_v8 = vpop.xlane.xlu1 %3266  ;;  %v3264_v58 = vpop.xlane.xlu0 %3263  ;;  %v3282_v14 = vmul.f32 %v6411_v12, %v7157_v42  ;;  %v6297_v42 = vunpack.i.h.bf16 %v6295_v19  ;;  %v6112_v12 = vpack.c.bf16 %v6302_v57, %v6301_v44 }
 0x90e   : > { %6416 = vrcp.f32 %v3267_v8 }
 0x90f   : > { %6418 = vrcp.f32 %v3264_v58  ;;  %5818 = vmatprep.mubr.msk.f32.mxu0 %vm1601_vm10, %v3282_v14  ;;  %v6106_v45 = vpack.c.bf16 %v6297_v42, %v6296_v31 }
 0x910   : > { %v6413_v59 = vpop.eup %6412  ;;  %5819 = vmatmul.mubr.msk.f32.vlgmr.msra.gmra.mrb[40].mxu0 %vm1601_vm10, %v3283_v63 }
 0x911   : > { %6095 = vmatpush3.bf16.msra.mxu0 %v6092_v27  ;;  %v3273_v55 = vpop.xlane.xlu1 %3272  ;;  %v3270_v38 = vpop.xlane.xlu0 %3269  ;;  %v3284_v7 = vmul.f32 %v6413_v59, %v7163_v52 }
 0x912   : > { %6420 = vrcp.f32 %v3273_v55  ;;  %6102 = vmatprep.subr.msk.bf16.mxu0 %vm6823_vm9, %v6100_v11 }
 0x913   : > { %6422 = vrcp.f32 %v3270_v38  ;;  %5825 = vmatprep.mubr.msk.f32.mxu1 %vm1601_vm10, %v3284_v7 }
 0x914   : > { %v6415_v49 = vpop.eup %6414 }
 0x915   : > { %v3285_v35 = vmul.f32 %v6415_v49, %v7167_v3  ;;  %v3641_v0 = vpop.permute.xlu0 %3640  ;;  %v6305_v19 = vpop.permute.xlu1 %6304 }
 0x916   : > { %v6307_v13 = vunpack.i.h.bf16 %v6305_v19 }
 0x917   : > { %5826 = vmatmul.mubr.msk.f32.vlgmr.msra.gmra.mrb[48].mxu1 %vm1601_vm10, %v3285_v35 }
 0x918   : > { %v6417_v27 = vpop.eup %6416  ;;  %6099 = vmatpush3.bf16.msra.mxu1 %v7173_v25  ;;  %v6306_v25 = vunpack.i.l.bf16 %v6305_v19 }
 0x919   : > { %v6419_v52 = vpop.eup %6418  ;;  %v3287_v6 = vmul.f32 %v6417_v27, %v7171_v37  ;;  %6108 = vmatprep.subr.msk.bf16.mxu1 %vm6823_vm9, %v6106_v45  ;;  %v3730_v8 = vpop.permute.xlu0 %3729 }
 0x91a   : > { %v3286_v2 = vmul.f32 %v6419_v52, %v7175_v48  ;;  %v6118_v48 = vpack.c.bf16 %v6307_v13, %v6306_v25 }
 0x91c   : > { %v6421_v50 = vpop.eup %6420  ;;  %5832 = vmatprep.mubr.msk.f32.mxu0 %vm1601_vm10, %v3286_v2 }
 0x91d   : > { %v6423_v3 = vpop.eup %6422  ;;  %v3289_v5 = vmul.f32 %v6421_v50, %v7182_v20  ;;  %5833 = vmatmul.mubr.msk.f32.vlgmr.msra.gmra.mrb[42].mxu0 %vm1601_vm10, %v3287_v6  ;;  %v3821_v20 = vpop.permute.xlu0 %3820 }
 0x91e   : > { %6105 = vmatpush3.bf16.xpose.msk.msra.mxu0 %vm6823_vm9, %v6100_v11  ;;  %5846 = vmatprep.mubr.msk.f32.mxu0 %vm1244_vm8, %v3639_v56  ;;  %v3288_v37 = vmul.f32 %v6423_v3, %v7184_v23  ;;  %v3732_v56 = vpop.permute.xlu1 %3731 }
 0x91f   : > { %6114 = vmatprep.subr.msk.bf16.mxu0 %vm6823_vm9, %v6112_v12 }
 0x920   : > { %5839 = vmatprep.mubr.msk.f32.mxu1 %vm1601_vm10, %v3288_v37 }
 0x921   : > { %5840 = vmatmul.mubr.msk.f32.vlgmr.msra.gmra.mrb[50].mxu1 %vm1601_vm10, %v3289_v5  ;;  %v3912_v23 = vpop.permute.xlu0 %3911 }
 0x922   : > { %6111 = vmatpush3.bf16.xpose.msk.msra.mxu1 %vm6823_vm9, %v6106_v45  ;;  %5853 = vmatprep.mubr.msk.f32.mxu1 %vm1244_vm8, %v3730_v8  ;;  %v3823_v62 = vpop.permute.xlu1 %3822 }
 0x923   : > { %6120 = vmatprep.subr.msk.bf16.mxu1 %vm6823_vm9, %v6118_v48 }
 0x925   : > { %5847 = vmatmul.mubr.msk.f32.vlgmr.msra.gmra.mrb[44].mxu0 %vm1244_vm8, %v3641_v0 }
 0x926   : > { %6117 = vmatpush3.bf16.xpose.msk.msra.mxu0 %vm6823_vm9, %v6112_v12  ;;  %5860 = vmatprep.mubr.msk.f32.mxu0 %vm1244_vm8, %v3821_v20  ;;  %v3914_v58 = vpop.permute.xlu1 %3913 }
 0x929   : > { %5854 = vmatmul.mubr.msk.f32.vlgmr.msra.gmra.mrb[52].mxu1 %vm1244_vm8, %v3732_v56 }
 0x92a   : > { %6123 = vmatpush3.bf16.xpose.msk.msra.mxu1 %vm6823_vm9, %v6118_v48  ;;  %5867 = vmatprep.mubr.msk.f32.mxu1 %vm1244_vm8, %v3912_v23 }
 0x92d   : > { %5861 = vmatmul.mubr.msk.f32.vlgmr.msra.gmra.mrb[46].mxu0 %vm1244_vm8, %v3823_v62 }
 0x931   : > { %5868 = vmatmul.mubr.msk.f32.vlgmr.msra.gmra.mrb[54].mxu1 %vm1244_vm8, %v3914_v58 }
 0x9e3   : > { %v7247_v14 = vpop.f32.mrb[40].mxu0 }
 0x9e4   : > { %v7249_v63 = vpop.f32.mrb[41].mxu0 }
 0x9ea   : > { %v7251_v59 = vpop.f32.mrb[48].mxu1 }
 0x9eb   : > { %v7253_v11 = vpop.f32.mrb[49].mxu1 }
 0x9f0   : > { %v7255_v55 = vpop.f32.mrb[42].mxu0 }
 0x9f1   : > { %v7257_v38 = vpop.f32.mrb[43].mxu0 }
 0x9f4   : > { %v7259_v61 = vpop.f32.mrb[50].mxu1 }
 0x9f5   : > { %v7261_v7 = vpop.f32.mrb[51].mxu1 }
 0x9f8   : > { %v5848_v42 = vpop.f32.mrb[44].mxu0 }
 0x9f9   : > { %v4003_v31 = vmul.f32 0.35355338, %v5848_v42  ;;  %v3720_v49 = vpop.f32.mrb[45].mxu0 }
 0x9fa   : > { %v4002_v35 = vmul.f32 0.35355338, %v3720_v49 }
 0x9fb   : > { %v4013_v45 = vsel %vm1601_vm10, %v4003_v31, -inf }
 0x9fc   : > { %v5855_v0 = vpop.f32.mrb[52].mxu1  ;;  %4014 = vmax.xlane.f32.xlu1 %v4013_v45  ;;  %v4010_v27 = vsel %vm1601_vm10, %v4002_v35, -inf }
 0x9fd   : > { %v4005_v52 = vmul.f32 0.35355338, %v5855_v0  ;;  %v3811_v57 = vpop.f32.mrb[53].mxu1  ;;  %4011 = vmax.xlane.f32.xlu0 %v4010_v27 }
 0x9fe   : > { %v4004_v6 = vmul.f32 0.35355338, %v3811_v57 }
 0x9ff   : > { %v4019_v44 = vsel %vm1601_vm10, %v4005_v52, -inf }
 0xa00   : > { %v5862_v19 = vpop.f32.mrb[46].mxu0  ;;  %v4016_v13 = vsel %vm1601_vm10, %v4004_v6, -inf }
 0xa01   : > { %v4007_v2 = vmul.f32 0.35355338, %v5862_v19  ;;  %4020 = vmax.xlane.f32.xlu0 %v4019_v44  ;;  %v3902_v50 = vpop.f32.mrb[47].mxu0 }
 0xa02   : > { %v4006_v12 = vmul.f32 0.35355338, %v3902_v50 }
 0xa03   : > { %v4025_v3 = vsel %vm1601_vm10, %v4007_v2, -inf }
 0xa04   : > { %v5869_v5 = vpop.f32.mrb[54].mxu1  ;;  %4026 = vmax.xlane.f32.xlu1 %v4025_v3  ;;  %v4022_v20 = vsel %vm1601_vm10, %v4006_v12, -inf }
 0xa05   : > { %v4009_v25 = vmul.f32 0.35355338, %v5869_v5  ;;  %v3993_v8 = vpop.f32.mrb[55].mxu1  ;;  %4017 = vmax.xlane.f32.xlu0 %v4016_v13 }
 0xa06   : > { %v4008_v48 = vmul.f32 0.35355338, %v3993_v8 }
 0xa07   : > { %v4031_v37 = vsel %vm1601_vm10, %v4009_v25, -inf }
 0xa08   : > { %4032 = vmax.xlane.f32.xlu1 %v4031_v37  ;;  %v4028_v56 = vsel %vm1601_vm10, %v4008_v48, -inf }
 0xa09   : > { %4023 = vmax.xlane.f32.xlu0 %v4022_v20 }
 0xa0d   : > { %4029 = vmax.xlane.f32.xlu0 %v4028_v56 }
 0xa89   : > { %v4015_v23 = vpop.xlane.xlu1 %4014 }
 0xa8a   : > { %v4035_v62 = vsub.f32 %v4003_v31, %v4015_v23  ;;  %v4012_v58 = vpop.xlane.xlu0 %4011 }
 0xa8b   : > { %v4034_v42 = vsub.f32 %v4002_v35, %v4012_v58 }
 0xa8c   : > { %v4044_v49 = vmul.f32 1.442695, %v4035_v62 }
 0xa8d   : > { %v4042_v45 = vmul.f32 1.442695, %v4034_v42 }
 0xa8e   : > { %6424 = vpow2.f32 %v4044_v49  ;;  %v4021_v0 = vpop.xlane.xlu0 %4020 }
 0xa8f   : > { %6426 = vpow2.f32 %v4042_v45  ;;  %v4037_v27 = vsub.f32 %v4005_v52, %v4021_v0 }
 0xa91   : > { %v4048_v57 = vmul.f32 1.442695, %v4037_v27  ;;  %v4027_v44 = vpop.xlane.xlu1 %4026 }
 0xa92   : > { %v4039_v19 = vsub.f32 %v4007_v2, %v4027_v44  ;;  %v4018_v50 = vpop.xlane.xlu0 %4017 }
 0xa93   : > { %6428 = vpow2.f32 %v4048_v57  ;;  %v4036_v3 = vsub.f32 %v4004_v6, %v4018_v50 }
 0xa94   : > { %v4052_v5 = vmul.f32 1.442695, %v4039_v19 }
 0xa95   : > { %v4046_v13 = vmul.f32 1.442695, %v4036_v3  ;;  %v4033_v8 = vpop.xlane.xlu1 %4032 }
 0xa96   : > { %6430 = vpow2.f32 %v4052_v5  ;;  %v4041_v37 = vsub.f32 %v4009_v25, %v4033_v8  ;;  %v4024_v31 = vpop.xlane.xlu0 %4023 }
 0xa97   : > { %6432 = vpow2.f32 %v4046_v13  ;;  %v4038_v35 = vsub.f32 %v4006_v12, %v4024_v31 }
 0xa98   : > { %v7271_v20 = vpop.eup %6424  ;;  %v4056_v56 = vmul.f32 1.442695, %v4041_v37 }
 0xa99   : > { %v7273_v23 = vpop.eup %6426  ;;  %v4050_v52 = vmul.f32 1.442695, %v4038_v35  ;;  %v4061_v2 = vsel %vm1601_vm10, %v7271_v20, 0.0 }
 0xa9a   : > { %6434 = vpow2.f32 %v4056_v56  ;;  %4062 = vadd.xlane.f32.xlu1 %v4061_v2  ;;  %v4030_v6 = vpop.xlane.xlu0 %4029  ;;  %v4058_v62 = vsel %vm1601_vm10, %v7273_v23, 0.0 }
 0xa9b   : > { %6436 = vpow2.f32 %v4050_v52  ;;  %v4040_v25 = vsub.f32 %v4008_v48, %v4030_v6  ;;  %4059 = vadd.xlane.f32.xlu0 %v4058_v62 }
 0xa9d   : > { %v7279_v58 = vpop.eup %6428  ;;  %v4054_v12 = vmul.f32 1.442695, %v4040_v25 }
 0xa9e   : > { %v4067_v42 = vsel %vm1601_vm10, %v7279_v58, 0.0 }
 0xa9f   : > { %6438 = vpow2.f32 %v4054_v12  ;;  %4068 = vadd.xlane.f32.xlu1 %v4067_v42 }
 0xaa0   : > { %v7283_v49 = vpop.eup %6430 }
 0xaa1   : > { %v7285_v45 = vpop.eup %6432  ;;  %v4073_v0 = vsel %vm1601_vm10, %v7283_v49, 0.0 }
 0xaa2   : > { %v4064_v27 = vsel %vm1601_vm10, %v7285_v45, 0.0 }
 0xaa3   : > { %4074 = vadd.xlane.f32.xlu1 %v4073_v0  ;;  %4065 = vadd.xlane.f32.xlu0 %v4064_v27 }
 0xaa4   : > { %v7291_v48 = vpop.eup %6434 }
 0xaa5   : > { %v7293_v57 = vpop.eup %6436  ;;  %v4079_v44 = vsel %vm1601_vm10, %v7291_v48, 0.0 }
 0xaa6   : > { %v4070_v19 = vsel %vm1601_vm10, %v7293_v57, 0.0 }
 0xaa7   : > { %4080 = vadd.xlane.f32.xlu1 %v4079_v44  ;;  %4071 = vadd.xlane.f32.xlu0 %v4070_v19  ;;  %v4567_v44 = vld [vmem:[%s7575_s8 + $0x8] sm:$0xff] }
 0xaa9   : > { %v7299_v50 = vpop.eup %6438 }
 0xaaa   : > { %v4076_v3 = vsel %vm1601_vm10, %v7299_v50, 0.0 }
 0xaab   : > { %4077 = vadd.xlane.f32.xlu0 %v4076_v3 }
 0xab8   : > { %6314 = vrot.lane.b32.xlu1 %v6879_v33, %s6524_s28 }
 0xabc   : > { %6319 = vrot.lane.b32.xlu1 %v6883_v39, %s6524_s28 }
 0xac0   : > { %6324 = vrot.lane.b32.xlu1 %v6888_v47, %s6524_s28 }
 0xac1   : > { %6309 = vrot.lane.b32.xlu0 %v6875_v26, %s6524_s28  ;;  %s5087_s28 = sshll.u32 %s423_s26, 4  ;;  %s7527_s28 = int_to_ptr.vmem [resolvable:$true] %s5087_s28 }
 0xac2   : > { %s6457_s16 = scalar_lea.vmem %s7527_s28, 64  ;;  %p6464_p0 = scmp.lt.s32.totalorder %s7527_s28, %s6462_s18 }
 0xac3   : > { %p6458_p11 = scmp.ne.s32.totalorder %s7527_s28, %s6457_s16  ;;  %p6465_p1 = scmp.lt.s32.totalorder %s6463_s0, %s6457_s16 }
 0xac4   : > { %4456 = vrot.lane.b32.xlu1 %v7115_v10, %s6525_s29 }
 0xac5   : > { %4454 = vrot.lane.b32.xlu0 %v7117_v53, %s6525_s29  ;;  %p6459_p12 = pnand %p6458_p11, %p6632_p5  ;;  %p6466_p2 = por %p6465_p1, %p6464_p0 }
 0xac7   : > { %p6460_p13 = pneg %p6459_p12 }
 0xac8   : > { %4488 = vrot.lane.b32.xlu1 %v7247_v14, %s6526_s2 }
 0xac9   : > { %4486 = vrot.lane.b32.xlu0 %v7249_v63, %s6526_s2  ;;  %p6467_p3 = pnand %p6466_p2, %p6460_p13 }
 0xacc   : > { %4460 = vrot.lane.b32.xlu1 %v7119_v41, %s6525_s29 }
 0xacd   : > { %4458 = vrot.lane.b32.xlu0 %v7121_v60, %s6525_s29 }
 0xad0   : > { %4492 = vrot.lane.b32.xlu1 %v7251_v59, %s6526_s2 }
 0xad1   : > { %4490 = vrot.lane.b32.xlu0 %v7253_v11, %s6526_s2 }
 0xad4   : > { %4464 = vrot.lane.b32.xlu1 %v7123_v9, %s6525_s29 }
 0xad5   : > { %4462 = vrot.lane.b32.xlu0 %v7125_v18, %s6525_s29 }
 0xad8   : > { %4496 = vrot.lane.b32.xlu1 %v7255_v55, %s6526_s2 }
 0xad9   : > { %4494 = vrot.lane.b32.xlu0 %v7257_v38, %s6526_s2 }
 0xadc   : > { %4468 = vrot.lane.b32.xlu1 %v7127_v40, %s6525_s29 }
 0xadd   : > { %4466 = vrot.lane.b32.xlu0 %v7129_v54, %s6525_s29  ;;  %s6527_s29 = smov 24  }
 0xae0   : > { %4500 = vrot.lane.b32.xlu1 %v7259_v61, %s6526_s2 }
 0xae1   : > { %4498 = vrot.lane.b32.xlu0 %v7261_v7, %s6526_s2 }
 0xb27   : > { %v4063_v26 = vpop.xlane.xlu1 %4062 }
 0xb28   : > { %v4060_v33 = vpop.xlane.xlu0 %4059 }
 0xb29   : > { %6440 = vrcp.f32 %v4060_v33 }
 0xb2c   : > { %v4069_v39 = vpop.xlane.xlu1 %4068 }
 0xb2d   : > { %6442 = vrcp.f32 %v4069_v39 }
 0xb30   : > { %v4075_v47 = vpop.xlane.xlu1 %4074  ;;  %v4066_v10 = vpop.xlane.xlu0 %4065 }
 0xb31   : > { %6444 = vrcp.f32 %v4066_v10 }
 0xb32   : > { %6446 = vrcp.f32 %v4063_v26 }
 0xb33   : > { %v6441_v53 = vpop.eup %6440 }
 0xb34   : > { %v4081_v41 = vpop.xlane.xlu1 %4080  ;;  %v4072_v60 = vpop.xlane.xlu0 %4071  ;;  %v4090_v9 = vmul.f32 %v6441_v53, %v7273_v23 }
 0xb35   : > { %6448 = vrcp.f32 %v4072_v60 }
 0xb36   : > { %5874 = vmatprep.mubr.msk.f32.mxu0 %vm1601_vm10, %v4090_v9 }
 0xb37   : > { %v6443_v63 = vpop.eup %6442 }
 0xb38   : > { %v6315_v18 = vpop.permute.xlu1 %6314  ;;  %v4078_v40 = vpop.xlane.xlu0 %4077  ;;  %v4093_v37 = vmul.f32 %v6443_v63, %v7279_v58 }
 0xb39   : > { %v6317_v54 = vunpack.i.h.bf16 %v6315_v18  ;;  %v6316_v14 = vunpack.i.l.bf16 %v6315_v18  ;;  %6450 = vrcp.f32 %v4078_v40 }
 0xb3a   : > { %6452 = vrcp.f32 %v4075_v47 }
 0xb3b   : > { %6454 = vrcp.f32 %v4081_v41  ;;  %v6128_v59 = vpack.c.bf16 %v6317_v54, %v6316_v14  ;;  %v6445_v11 = vpop.eup %6444 }
 0xb3c   : > { %v6320_v55 = vpop.permute.xlu1 %6319  ;;  %v6310_v38 = vpop.permute.xlu0 %6309  ;;  %v4092_v8 = vmul.f32 %v6445_v11, %v7285_v45 }
 0xb3d   : > { %v6322_v61 = vunpack.i.h.bf16 %v6320_v55  ;;  %v6321_v7 = vunpack.i.l.bf16 %v6320_v55  ;;  %v6312_v5 = vunpack.i.h.bf16 %v6310_v38  ;;  %v6311_v13 = vunpack.i.l.bf16 %v6310_v38  ;;  %6129 = vmatprep.subr.bf16.mxu1 %v6128_v59  ;;  %v6447_v35 = vpop.eup %6446 }
 0xb3e   : > { %6131 = vmatpush3.bf16.msra.mxu1 %v6128_v59  ;;  %5881 = vmatprep.mubr.msk.f32.mxu1 %vm1601_vm10, %v4092_v8  ;;  %v4091_v25 = vmul.f32 %v6447_v35, %v7271_v20 }
 0xb3f   : > { %v6124_v31 = vpack.c.bf16 %v6312_v5, %v6311_v13  ;;  %v6449_v23 = vpop.eup %6448  ;;  %v6132_v52 = vpack.c.bf16 %v6322_v61, %v6321_v7 }
 0xb40   : > { %v6325_v56 = vpop.permute.xlu1 %6324  ;;  %v4094_v58 = vmul.f32 %v6449_v23, %v7293_v57  ;;  %v4566_v57 = vld [vmem:[%s7575_s8] sm:$0xff]  ;;  %v4455_v9 = vpop.permute.xlu0 %4454 }
 0xb41   : > { %v6327_v2 = vunpack.i.h.bf16 %v6325_v56  ;;  %v6326_v6 = vunpack.i.l.bf16 %v6325_v56  ;;  %6125 = vmatprep.subr.bf16.mxu0 %v6124_v31  ;;  %5882 = vmatmul.mubr.msk.f32.vlgmr.msra.gmra.mrb[56].mxu1 %vm1601_vm10, %v4093_v37  ;;  %v6140_v19 = vpack.c.bf16 %v4567_v44, %v4566_v57  ;;  %v4542_v37 = vsel %vm1244_vm8, %v6985_v4, %v4455_v9  ;;  %v7414_v9 = vld [vmem:[%s7578_s11] sm:$0xff] }
 0xb42   : > { %6127 = vmatpush3.bf16.msra.mxu0 %v6124_v31 }
 0xb43   : > { %v6451_v62 = vpop.eup %6450  ;;  %v6136_v12 = vpack.c.bf16 %v6327_v2, %v6326_v6  ;;  %6133 = vmatprep.subr.bf16.mxu0 %v6132_v52 }
 0xb44   : > { %v6453_v42 = vpop.eup %6452  ;;  %v4096_v45 = vmul.f32 %v6451_v62, %v7299_v50  ;;  %v4457_v60 = vpop.permute.xlu1 %4456 }
 0xb45   : > { %v6455_v0 = vpop.eup %6454  ;;  %5875 = vmatmul.mubr.msk.f32.vlgmr.msra.gmra.mrb[48].mxu0 %vm1601_vm10, %v4091_v25  ;;  %6137 = vmatprep.subr.bf16.mxu1 %v6136_v12  ;;  %v4095_v27 = vmul.f32 %v6453_v42, %v7283_v49  ;;  %v4568_v49 = vld [vmem:[%s7575_s8 + $0x10] sm:$0xff]  ;;  %v4487_v40 = vpop.permute.xlu0 %4486  ;;  %v4543_v35 = vsel %vm1244_vm8, %v6983_v1, %v4457_v60  ;;  %v4572_v60 = vsub.s32 3, %v6699_v28 }
 0xb46   : > { %6135 = vmatpush3.bf16.msra.mxu0 %v6132_v52  ;;  %5888 = vmatprep.mubr.msk.f32.mxu0 %vm1601_vm10, %v4094_v58  ;;  %v4097_v20 = vmul.f32 %v6455_v0, %v7291_v48  ;;  %v4569_v48 = vld [vmem:[%s7575_s8 + $0x18] sm:$0xff]  ;;  %v4550_v56 = vsel %vm1601_vm10, %v4542_v37, %v4487_v40 }
 0xb47   : > { %6139 = vmatpush3.bf16.msra.mxu1 %v6136_v12  ;;  %5895 = vmatprep.mubr.msk.f32.mxu1 %vm1601_vm10, %v4096_v45  ;;  %v6144_v50 = vpack.c.bf16 %v4569_v48, %v4568_v49 }
 0xb48   : > { %6141 = vmatprep.subr.bf16.mxu0 %v6140_v19  ;;  %v4489_v18 = vpop.permute.xlu1 %4488 }
 0xb49   : > { %5889 = vmatmul.mubr.msk.f32.vlgmr.msra.gmra.mrb[50].mxu0 %vm1601_vm10, %v4095_v27  ;;  %v4459_v14 = vpop.permute.xlu0 %4458  ;;  %v4551_v52 = vsel %vm1601_vm10, %v4543_v35, %v4489_v18  ;;  %v4573_v18 = vrot.slane %v7414_v9, %v4572_v60 }
 0xb4a   : > { %5896 = vmatmul.mubr.msk.f32.vlgmr.msra.gmra.mrb[58].mxu1 %vm1601_vm10, %v4097_v20  ;;  %6143 = vmatpush3.bf16.msra.mxu0 %v6140_v19  ;;  %v4544_v62 = vsel %vm1244_vm8, %v6989_v51, %v4459_v14 }
 0xb4b   : > { %6145 = vmatprep.subr.bf16.mxu0 %v6144_v50 }
 0xb4c   : > { %v4461_v54 = vpop.permute.xlu1 %4460 }
 0xb4d   : > { %v4491_v59 = vpop.permute.xlu0 %4490  ;;  %v4545_v1 = vsel %vm1244_vm8, %v6987_v22, %v4461_v54 }
 0xb4e   : > { %6147 = vmatpush3.bf16.msra.mxu0 %v6144_v50  ;;  %v4552_v25 = vsel %vm1601_vm10, %v4544_v62, %v4491_v59  ;;  %v7596_v59 = vmax.f32 %v6750_v16, 0.0  ;;  %v7599_v16 = vmax.f32 %v6753_v21, 0.0  ;;  %v7600_v21 = vmax.f32 %v6772_v36, 0.0 }
 0xb50   : > { %v4493_v63 = vpop.permute.xlu1 %4492 }
 0xb51   : > { %v4463_v55 = vpop.permute.xlu0 %4462  ;;  %v4553_v42 = vsel %vm1601_vm10, %v4545_v1, %v4493_v63 }
 0xb52   : > { %v4546_v51 = vsel %vm1244_vm8, %v6993_v30, %v4463_v55  ;;  %v7597_v55 = vmax.f32 %v6748_v15, 0.0 }
 0xb54   : > { %v4465_v11 = vpop.permute.xlu1 %4464 }
 0xb55   : > { %v4495_v61 = vpop.permute.xlu0 %4494  ;;  %v4547_v22 = vsel %vm1244_vm8, %v6991_v29, %v4465_v11 }
 0xb56   : > { %v4554_v27 = vsel %vm1601_vm10, %v4546_v51, %v4495_v61 }
 0xb58   : > { %v4497_v38 = vpop.permute.xlu1 %4496 }
 0xb59   : > { %v4467_v5 = vpop.permute.xlu0 %4466  ;;  %v4555_v57 = vsel %vm1601_vm10, %v4547_v22, %v4497_v38 }
 0xb5a   : > { %v4548_v30 = vsel %vm1244_vm8, %v6997_v34, %v4467_v5  ;;  %v4720_v34 = vld [vmem:[%s7576_s9] sm:$0xff] }
 0xb5c   : > { %v4469_v7 = vpop.permute.xlu1 %4468 }
 0xb5d   : > { %v4499_v8 = vpop.permute.xlu0 %4498  ;;  %v4549_v29 = vsel %vm1244_vm8, %v6995_v17, %v4469_v7  ;;  %v4721_v17 = vld [vmem:[%s7576_s9 + $0x8] sm:$0xff] }
 0xb5e   : > { %v4556_v48 = vsel %vm1601_vm10, %v4548_v30, %v4499_v8 }
 0xb60   : > { %v4501_v13 = vpop.permute.xlu1 %4500 }
 0xc14   : > { %v5883_v3 = vpop.f32.mrb[56].mxu1 }
 0xc15   : > { %v4263_v26 = vpop.f32.mrb[57].mxu1 }
 0xc18   : > { %v5876_v33 = vpop.f32.mrb[48].mxu0 }
 0xc19   : > { %4520 = vrot.lane.b32.xlu1 %v5876_v33, %s6527_s29  ;;  %v4176_v39 = vpop.f32.mrb[49].mxu0 }
 0xc1a   : > { %4518 = vrot.lane.b32.xlu0 %v4176_v39, %s6527_s29  ;;  %v6148_v39 = vpack.c.bf16 %v4721_v17, %v4720_v34 }
 0xc1c   : > { %v5890_v47 = vpop.f32.mrb[50].mxu0  ;;  %6149 = vmatprep.subr.bf16.mxu1 %v6148_v39 }
 0xc1d   : > { %v5897_v10 = vpop.f32.mrb[58].mxu1  ;;  %4524 = vrot.lane.b32.xlu1 %v5883_v3, %s6527_s29  ;;  %v4350_v53 = vpop.f32.mrb[51].mxu0  ;;  %v4557_v3 = vsel %vm1601_vm10, %v4549_v29, %v4501_v13  ;;  %6151 = vmatpush3.bf16.msra.mxu1 %v6148_v39 }
 0xc1e   : > { %v4437_v41 = vpop.f32.mrb[59].mxu1  ;;  %4522 = vrot.lane.b32.xlu0 %v4263_v26, %s6527_s29 }
 0xc21   : > { %4528 = vrot.lane.b32.xlu1 %v5890_v47, %s6527_s29  ;;  %v4722_v47 = vld [vmem:[%s7576_s9 + $0x10] sm:$0xff] }
 0xc22   : > { %4526 = vrot.lane.b32.xlu0 %v4350_v53, %s6527_s29  ;;  %5922 = vmatprep.subr.mxu1 %v4722_v47  ;;  %v4865_v53 = vld [vmem:[%s7577_s10 + $0x8] sm:$0xff] }
 0xc23   : > { %5923 = vmatpush3.msra.mxu1 %v4722_v47 }
 0xc25   : > { %4532 = vrot.lane.b32.xlu1 %v5897_v10, %s6527_s29  ;;  %v4864_v10 = vld [vmem:[%s7577_s10] sm:$0xff] }
 0xc26   : > { %4530 = vrot.lane.b32.xlu0 %v4437_v41, %s6527_s29  ;;  %v6152_v41 = vpack.c.bf16 %v4865_v53, %v4864_v10 }
 0xc28   : > { %6153 = vmatprep.subr.bf16.mxu0 %v6152_v41 }
 0xc8b   : > { %v4521_v31 = vpop.permute.xlu1 %4520 }
 0xc8c   : > { %v4519_v23 = vpop.permute.xlu0 %4518  ;;  %v4559_v6 = vsel %vm898_vm7, %v4551_v52, %v4521_v31  ;;  %v7598_v31 = vmax.f32 %v6756_v24, 0.0 }
 0xc8d   : > { %v4558_v2 = vsel %vm898_vm7, %v4550_v56, %v4519_v23 }
 0xc8e   : > { %5906 = vmatprep.mubr.msk.f32.mxu0 %vm4574_vm11, %v4558_v2 }
 0xc8f   : > { %v4525_v4 = vpop.permute.xlu1 %4524  ;;  %5907 = vmatmul.mubr.msk.f32.vlgmr.msra.gmra.mrb[52].mxu0 %vm4574_vm11, %v4559_v6 }
 0xc90   : > { %v4523_v12 = vpop.permute.xlu0 %4522  ;;  %v4561_v45 = vsel %vm898_vm7, %v4553_v42, %v4525_v4  ;;  %6155 = vmatpush3.bf16.msra.mxu0 %v6152_v41  ;;  %v7601_v4 = vmax.f32 %v6763_v32, 0.0  ;;  %v7602_v32 = vmax.f32 %v6787_v46, 0.0  ;;  %v4725_v46 = vsub.s32 4, %v6699_v28 }
 0xc91   : > { %v4560_v58 = vsel %vm898_vm7, %v4552_v25, %v4523_v12 }
 0xc92   : > { %5909 = vmatprep.mubr.msk.f32.mxu0 %vm4574_vm11, %v4560_v58 }
 0xc93   : > { %5910 = vmatmul.mubr.msk.f32.gmra.mrb[54].mxu0 %vm4574_vm11, %v4561_v45  ;;  %v4529_v0 = vpop.permute.xlu1 %4528 }
 0xc94   : > { %v4527_v20 = vpop.permute.xlu0 %4526  ;;  %v4563_v49 = vsel %vm898_vm7, %v4555_v57, %v4529_v0  ;;  %v7603_v0 = vmax.f32 %v6781_v43, 0.0  ;;  %v4866_v43 = vld [vmem:[%s7577_s10 + $0x10] sm:$0xff]  ;;  %v4726_v57 = vrot.slane %v7414_v9, %v4725_v46 }
 0xc95   : > { %v4562_v44 = vsel %vm898_vm7, %v4554_v27, %v4527_v20  ;;  %5940 = vmatprep.subr.mxu0 %v4866_v43 }
 0xc96   : > { %5912 = vmatprep.mubr.msk.f32.mxu0 %vm4574_vm11, %v4562_v44  ;;  %5941 = vmatpush3.msra.mxu0 %v4866_v43 }
 0xc97   : > { %v4533_v19 = vpop.permute.xlu1 %4532  ;;  %5913 = vmatmul.mubr.msk.f32.gmra.mrb[56].mxu0 %vm4574_vm11, %v4563_v49 }
 0xc98   : > { %v4531_v50 = vpop.permute.xlu0 %4530  ;;  %v4565_v33 = vsel %vm898_vm7, %v4557_v3, %v4533_v19 }
 0xc99   : > { %v4564_v26 = vsel %vm898_vm7, %v4556_v48, %v4531_v50 }
 0xc9a   : > { %5915 = vmatprep.mubr.msk.f32.mxu0 %vm4574_vm11, %v4564_v26 }
 0xc9b   : > { %5916 = vmatmul.mubr.msk.f32.gmra.mrb[58].mxu0 %vm4574_vm11, %v4565_v33 }
 0xd62   : > { %v5908_v40 = vpop.f32.mrb[52].mxu0 }
 0xd63   : > { %v4671_v54 = vadd.f32 %v5908_v40, %v4573_v18  ;;  %v4665_v14 = vpop.f32.mrb[53].mxu0 }
 0xd64   : > { %v4666_v63 = vadd.f32 %v4665_v14, %v4573_v18 }
 0xd65   : > { %v7419_v11 = vadd.f32 %v4671_v54, %v7596_v59 }
 0xd66   : > { %v7423_v38 = vadd.f32 %v4666_v63, %v7597_v55  ;;  %v5911_v61 = vpop.f32.mrb[54].mxu0  ;;  %v4869_v55 = vsub.s32 5, %v6699_v28 }
 0xd67   : > { %v4681_v7 = vadd.f32 %v5911_v61, %v4573_v18  ;;  %v4675_v5 = vpop.f32.mrb[55].mxu0  ;;  %v4713_v37 = vmax.f32 %v7419_v11, 0.0 }
 0xd68   : > { %v4712_v13 = vmax.f32 %v7423_v38, 0.0  ;;  %v4676_v8 = vadd.f32 %v4675_v5, %v4573_v18  ;;  %v4870_v61 = vrot.slane %v7414_v9, %v4869_v55 }
 0xd69   : > { %v7429_v35 = vadd.f32 %v4681_v7, %v7598_v31 }
 0xd6a   : > { %v7433_v56 = vadd.f32 %v4676_v8, %v7599_v16  ;;  %v5914_v23 = vpop.f32.mrb[56].mxu0  ;;  %5924 = vmatprep.mubr.msk.f32.mxu1 %vm898_vm7, %v4712_v13 }
 0xd6b   : > { %v4691_v15 = vadd.f32 %v5914_v23, %v4573_v18  ;;  %v4685_v52 = vpop.f32.mrb[57].mxu0  ;;  %5925 = vmatmul.mubr.msk.f32.vlgmr.msra.gmra.mrb[60].mxu1 %vm898_vm7, %v4713_v37  ;;  %v4715_v6 = vmax.f32 %v7429_v35, 0.0 }
 0xd6c   : > { %v4714_v2 = vmax.f32 %v7433_v56, 0.0  ;;  %v4686_v24 = vadd.f32 %v4685_v52, %v4573_v18 }
 0xd6d   : > { %v7445_v62 = vadd.f32 %v4691_v15, %v7600_v21 }
 0xd6e   : > { %v7449_v1 = vadd.f32 %v4686_v24, %v7601_v4  ;;  %v5917_v25 = vpop.f32.mrb[58].mxu0  ;;  %5927 = vmatprep.mubr.msk.f32.mxu1 %vm898_vm7, %v4714_v2 }
 0xd6f   : > { %v4701_v12 = vadd.f32 %v5917_v25, %v4573_v18  ;;  %v4695_v42 = vpop.f32.mrb[59].mxu0  ;;  %5928 = vmatmul.mubr.msk.f32.gmra.mrb[62].mxu1 %vm898_vm7, %v4715_v6  ;;  %v4717_v45 = vmax.f32 %v7445_v62, 0.0 }
 0xd70   : > { %v4716_v58 = vmax.f32 %v7449_v1, 0.0  ;;  %v4696_v36 = vadd.f32 %v4695_v42, %v4573_v18 }
 0xd71   : > { %v7461_v51 = vadd.f32 %v4701_v12, %v7602_v32 }
 0xd72   : > { %v7465_v22 = vadd.f32 %v4696_v36, %v7603_v0  ;;  %5930 = vmatprep.mubr.msk.f32.mxu1 %vm898_vm7, %v4716_v58 }
 0xd73   : > { %5931 = vmatmul.mubr.msk.f32.gmra.mrb[64].mxu1 %vm898_vm7, %v4717_v45  ;;  %v4719_v20 = vmax.f32 %v7461_v51, 0.0 }
 0xd74   : > { %v4718_v27 = vmax.f32 %v7465_v22, 0.0 }
 0xd76   : > { %5933 = vmatprep.mubr.msk.f32.mxu1 %vm898_vm7, %v4718_v27 }
 0xd77   : > { %5934 = vmatmul.mubr.msk.f32.gmra.mrb[66].mxu1 %vm898_vm7, %v4719_v20 }
 0xe3e   : > { %v5926_v44 = vpop.f32.mrb[60].mxu1 }
 0xe3f   : > { %v4823_v49 = vadd.f32 %v5926_v44, %v4726_v57  ;;  %v4817_v30 = vpop.f32.mrb[61].mxu1 }
 0xe40   : > { %v4818_v19 = vadd.f32 %v4817_v30, %v4726_v57 }
 0xe41   : > { %v4857_v50 = vmax.f32 %v4823_v49, 0.0 }
 0xe42   : > { %v4856_v29 = vmax.f32 %v4818_v19, 0.0  ;;  %v5929_v48 = vpop.f32.mrb[62].mxu1 }
 0xe43   : > { %v4833_v3 = vadd.f32 %v5929_v48, %v4726_v57  ;;  %v4827_v26 = vpop.f32.mrb[63].mxu1 }
 0xe44   : > { %v4828_v33 = vadd.f32 %v4827_v26, %v4726_v57  ;;  %5942 = vmatprep.mubr.msk.f32.mxu0 %vm898_vm7, %v4856_v29 }
 0xe45   : > { %5943 = vmatmul.mubr.msk.f32.vlgmr.msra.gmra.mrb[60].mxu0 %vm898_vm7, %v4857_v50  ;;  %v4859_v39 = vmax.f32 %v4833_v3, 0.0 }
 0xe46   : > { %v4858_v34 = vmax.f32 %v4828_v33, 0.0  ;;  %v5932_v17 = vpop.f32.mrb[64].mxu1 }
 0xe47   : > { %v4843_v47 = vadd.f32 %v5932_v17, %v4726_v57  ;;  %v4837_v10 = vpop.f32.mrb[65].mxu1 }
 0xe48   : > { %v4838_v53 = vadd.f32 %v4837_v10, %v4726_v57  ;;  %5945 = vmatprep.mubr.msk.f32.mxu0 %vm898_vm7, %v4858_v34 }
 0xe49   : > { %5946 = vmatmul.mubr.msk.f32.gmra.mrb[62].mxu0 %vm898_vm7, %v4859_v39  ;;  %v4861_v18 = vmax.f32 %v4843_v47, 0.0 }
 0xe4a   : > { %v4860_v41 = vmax.f32 %v4838_v53, 0.0  ;;  %v5935_v60 = vpop.f32.mrb[66].mxu1 }
 0xe4b   : > { %v4853_v40 = vadd.f32 %v5935_v60, %v4726_v57  ;;  %v4847_v54 = vpop.f32.mrb[67].mxu1 }
 0xe4c   : > { %v4848_v14 = vadd.f32 %v4847_v54, %v4726_v57  ;;  %5948 = vmatprep.mubr.msk.f32.mxu0 %vm898_vm7, %v4860_v41 }
 0xe4d   : > { %5949 = vmatmul.mubr.msk.f32.gmra.mrb[64].mxu0 %vm898_vm7, %v4861_v18  ;;  %v4863_v59 = vmax.f32 %v4853_v40, 0.0 }
 0xe4e   : > { %v4862_v63 = vmax.f32 %v4848_v14, 0.0 }
 0xe50   : > { %5951 = vmatprep.mubr.msk.f32.mxu0 %vm898_vm7, %v4862_v63 }
 0xe51   : > { %5952 = vmatmul.mubr.msk.f32.gmra.mrb[66].mxu0 %vm898_vm7, %v4863_v59 }
 0xf18   : > { %v5944_v7 = vpop.f32.mrb[60].mxu0 }
 0xf19   : > { %v4967_v5 = vadd.f32 %v5944_v7, %v4870_v61  ;;  %v4961_v8 = vpop.f32.mrb[61].mxu0 }
 0xf1a   : > { %v4962_v31 = vadd.f32 %v4961_v8, %v4870_v61 }
 0xf1b   : > { %v5001_v16 = vmax.f32 %v4967_v5, 0.0 }
 0xf1c   : > { %v5000_v23 = vmax.f32 %v4962_v31, 0.0  ;;  %v5947_v15 = vpop.f32.mrb[62].mxu0 }
 0xf1d   : > { %v5009_v52 = vadd.f32 %v5001_v16, %v4713_v37  ;;  %v4977_v24 = vadd.f32 %v5947_v15, %v4870_v61  ;;  %v4971_v21 = vpop.f32.mrb[63].mxu0 }
 0xf1e   : > { %v5008_v4 = vadd.f32 %v5000_v23, %v4712_v13  ;;  %v4972_v25 = vadd.f32 %v4971_v21, %v4870_v61 }
 0xf1f   : > { %v5017_v12 = vmax.f32 %v5009_v52, 0.0  ;;  %v5003_v28 = vmax.f32 %v4977_v24, 0.0 }
 0xf20   : > { %v5016_v42 = vmax.f32 %v5008_v4, 0.0  ;;  %v5002_v9 = vmax.f32 %v4972_v25, 0.0  ;;  %v5950_v36 = vpop.f32.mrb[64].mxu0 }
 0xf21   : > { %v5025_v32 = vsel %vm898_vm7, %v5017_v12, -inf  ;;  %v5011_v0 = vadd.f32 %v5003_v28, %v4715_v6  ;;  %v4987_v43 = vadd.f32 %v5950_v36, %v4870_v61  ;;  %v4981_v46 = vpop.f32.mrb[65].mxu0 }
 0xf22   : > { %v5024_v11 = vsel %vm898_vm7, %v5016_v42, -inf  ;;  %v5010_v37 = vadd.f32 %v5002_v9, %v4714_v2  ;;  %v4982_v38 = vadd.f32 %v4981_v46, %v4870_v61 }
 0xf23   : > { %v5026_v13 = vmax.f32 %v5024_v11, %v5025_v32  ;;  %v5019_v57 = vmax.f32 %v5011_v0, 0.0  ;;  %v5005_v44 = vmax.f32 %v4987_v43, 0.0 }
 0xf24   : > { %v5018_v49 = vmax.f32 %v5010_v37, 0.0  ;;  %v5004_v30 = vmax.f32 %v4982_v38, 0.0  ;;  %v5953_v19 = vpop.f32.mrb[66].mxu0 }
 0xf25   : > { %v5027_v29 = vrot.slane %v5026_v13, 4  ;;  %v5034_v48 = vsel %vm898_vm7, %v5019_v57, -inf  ;;  %v5013_v35 = vadd.f32 %v5005_v44, %v4717_v45  ;;  %v4997_v6 = vadd.f32 %v5953_v19, %v4870_v61  ;;  %v4991_v50 = vpop.f32.mrb[67].mxu0 }
 0xf26   : > { %v5033_v3 = vsel %vm898_vm7, %v5018_v49, -inf  ;;  %v5012_v56 = vadd.f32 %v5004_v30, %v4716_v58  ;;  %v4992_v2 = vadd.f32 %v4991_v50, %v4870_v61 }
 0xf27   : > { %v5028_v26 = vmax.f32 %v5026_v13, %v5027_v29  ;;  %v5035_v33 = vmax.f32 %v5033_v3, %v5034_v48  ;;  %v5021_v34 = vmax.f32 %v5013_v35, 0.0  ;;  %v5007_v17 = vmax.f32 %v4997_v6, 0.0 }
 0xf28   : > { %v5020_v39 = vmax.f32 %v5012_v56, 0.0  ;;  %v5006_v47 = vmax.f32 %v4992_v2, 0.0 }
 0xf29   : > { %v5029_v10 = vrot.slane %v5028_v26, 2  ;;  %v5036_v53 = vrot.slane %v5035_v33, 4  ;;  %v5043_v41 = vsel %vm898_vm7, %v5021_v34, -inf  ;;  %v5015_v62 = vadd.f32 %v5007_v17, %v4719_v20 }
 0xf2a   : > { %v5042_v45 = vsel %vm898_vm7, %v5020_v39, -inf  ;;  %v5014_v1 = vadd.f32 %v5006_v47, %v4718_v27 }
 0xf2b   : > { %v5030_v58 = vmax.f32 %v5028_v26, %v5029_v10  ;;  %v5037_v60 = vmax.f32 %v5035_v33, %v5036_v53  ;;  %v5044_v18 = vmax.f32 %v5042_v45, %v5043_v41  ;;  %v5023_v40 = vmax.f32 %v5015_v62, 0.0 }
 0xf2c   : > { %v5022_v54 = vmax.f32 %v5014_v1, 0.0 }
 0xf2d   : > { %v5038_v14 = vrot.slane %v5037_v60, 2  ;;  %v5045_v63 = vrot.slane %v5044_v18, 4  ;;  %v5052_v59 = vsel %vm898_vm7, %v5023_v40, -inf  ;;  %v5031_v61 = vrot.slane %v5030_v58, 1 }
 0xf2e   : > { %v5051_v55 = vsel %vm898_vm7, %v5022_v54, -inf }
 0xf2f   : > { %v5039_v51 = vmax.f32 %v5037_v60, %v5038_v14  ;;  %v5046_v20 = vmax.f32 %v5044_v18, %v5045_v63  ;;  %v5053_v7 = vmax.f32 %v5051_v55, %v5052_v59  ;;  %v5032_v27 = vmax.f32 %v5030_v58, %v5031_v61 }
 0xf31   : > { %v5040_v5 = vrot.slane %v5039_v51, 1  ;;  %v5047_v8 = vrot.slane %v5046_v20, 2  ;;  %v5054_v22 = vrot.slane %v5053_v7, 4 }
 0xf33   : > { %v5041_v31 = vmax.f32 %v5039_v51, %v5040_v5  ;;  %v5048_v16 = vmax.f32 %v5046_v20, %v5047_v8  ;;  %v5055_v23 = vmax.f32 %v5053_v7, %v5054_v22 }
 0xf35   : > { %v5049_v15 = vrot.slane %v5048_v16, 1  ;;  %v5056_v52 = vrot.slane %v5055_v23, 2  ;;  %v5065_v24 = vsel %vm5064_vm12, %v5041_v31, %v5032_v27 }
 0xf37   : > { %v5057_v21 = vmax.f32 %v5055_v23, %v5056_v52  ;;  %v5050_v4 = vmax.f32 %v5048_v16, %v5049_v15 }
 0xf39   : > { %v5058_v25 = vrot.slane %v5057_v21, 1  ;;  %v5067_v12 = vsel %vm5066_vm13, %v5050_v4, %v5065_v24 }
 0xf3b   : > { %v5059_v28 = vmax.f32 %v5057_v21, %v5058_v25 }
 0xf3d   : > { %v5069_v42 = vsel %vm5068_vm14, %v5059_v28, %v5067_v12 }
 0xf3e   : > { %5072 = vst.msk [vmem:[%s423_s26] sm:$0xf] %vm5071_vm15, %v5069_v42 }
 0xf3f   : > { %6470 = shalt.err (!%p6467_p3)
}
 0xf40   : > { %s6471_s17 = scalar_lea.hbm %s7525_s19, 64  ;;  %s6475_s29 = scalar_lea.hbm %s7579_s12, 128 }
 0xf41   : > { %p6472_p4 = scmp.ne.s32.totalorder %s7525_s19, %s6471_s17  ;;  %p6476_p9 = scmp.lt.u32.totalorder %s7525_s19, %s7579_s12 }
 0xf42   : > { %p6477_p10 = scmp.lt.u32.totalorder %s6475_s29, %s6471_s17  ;;  %p6479_p12 = scmp.lt.u32.totalorder %s6471_s17, %s7525_s19 }
 0xf43   : > { %p6473_p7 = pnand %p6472_p4, %p6632_p5 }
 0xf44   : > { %p6478_p11 = por %p6477_p10, %p6476_p9 }
 0xf45   : > { %p6474_p8 = pneg %p6473_p7 }
 0xf46   : > { %p6480_p13 = por %p6479_p12, %p6478_p11 }
 0xf48   : > { %p6481_p0 = pnand %p6480_p13, %p6474_p8 }
 0xf4a   : > { %6484 = shalt.err (!%p6481_p0)
}
 0xf4b   : > { %6162 = dma.vmem_to_hbm [thread:$0]  (%p6632_p5), %s7527_s28, 64, %s7525_s19, %s5074_s15  }
 0xf4c PF: > { %p6168_p1 = scmp.ge.s32.totalorder %s6519_s24, 2  ;;  %s5099_s0 = sand.u32 1, %s6507_s21  }
 0xf4d   : > { %s5100_s16 = scalar_lea.sflag [#allocation3], %s5099_s0 }
 0xf4e   : > { %p6165_p2 = pnand %p6168_p1, %p6636_p6 }
 0xf50   : > { %6502 = dma.done.wait (!%p6165_p2), %s5100_s16, 64  }
 0xf51   : > { %6504 = vsyncadd (!%p6165_p2), %s5100_s16, 4294967232  ;;  %p22_p3 = scmp.ge.s32.totalorder %s6619_s27, 4   ;;  %s7604_s21 = smov %s6511_s22 }
 0xf52   : > { %s7605_s22 = smov %s6515_s23  ;;  %s7606_s23 = smov %s6630_s30 }
 0xf53   : > { %s7607_s24 = smov %s6619_s27  ;;  %24 = sbr.rel (!%p22_p3) target bundleno = 6 (0x6), region = 106 }
 0xf5a   :  { %5105 = vsyncpa [#allocation3], 1 }
 0xf5b   :  { %5107 = vsyncpa [#allocation3 + $0x1], 1 }

</bundles_post_ra>
